<compile_context>
chip_gen: v7x
topology: tpu7x:2x2x1
jax: 0.10.0
libtpu: 0.0.40
codegen_flags: <defaults>
</compile_context>

<pallas_src>
import math
import numpy as np

import jax
import jax.numpy as jnp
from jax import lax
from jax.experimental import pallas as pl
from jax.experimental.pallas import tpu as pltpu


# ----------------------------------------------------------------------------
# Trace-time (numpy) helpers reproducing sinc / lanczos / ramp / reflect-pad /
# conv / bicubic as explicit row-operator matrices, so `resample` becomes
# out = Mh @ x @ Mw^T, which we further fold into a single Kronecker operator.
# ----------------------------------------------------------------------------
def _sinc_np(x):
    return np.where(x != 0, np.sin(np.pi * x) / (np.pi * x), 1.0)


def _lanczos_np(x, a):
    cond = np.logical_and(-a < x, x < a)
    out = np.where(cond, _sinc_np(x) * _sinc_np(x / a), 0.0)
    return out / out.sum()


def _ramp_np(ratio, width):
    n = math.ceil(width / ratio + 1)
    out = np.arange(n, dtype=np.float64) * ratio
    full = np.concatenate([-out[1:][::-1], out])
    return full[1:-1]


def _reflect_matrix(size, pad):
    m = np.zeros((size + 2 * pad, size), dtype=np.float64)
    for i in range(-pad, size + pad):
        if i < 0:
            j = -i
        elif i >= size:
            j = 2 * (size - 1) - i
        else:
            j = i
        m[i + pad, j] = 1.0
    return m


def _conv_matrix(size_padded, kernel):
    k = kernel.shape[0]
    out_size = size_padded - k + 1
    m = np.zeros((out_size, size_padded), dtype=np.float64)
    for o in range(out_size):
        m[o, o:o + k] = kernel
    return m


def _bicubic_matrix(din, dout, align_corners=True):
    # PyTorch bicubic (A = -0.75), align_corners semantics, index clamping.
    A = -0.75

    def cc1(x):  # |x| <= 1
        return ((A + 2.0) * x - (A + 3.0)) * x * x + 1.0

    def cc2(x):  # 1 < |x| < 2
        return ((A * x - 5.0 * A) * x + 8.0 * A) * x - 4.0 * A

    m = np.zeros((dout, din), dtype=np.float64)
    for i in range(dout):
        if align_corners:
            src = i * (din - 1) / (dout - 1) if dout > 1 else 0.0
        else:
            src = (i + 0.5) * din / dout - 0.5
        in0 = math.floor(src)
        t = src - in0
        w = [cc2(t + 1.0), cc1(t), cc1(1.0 - t), cc2(2.0 - t)]
        for k in range(4):
            idx = min(max(in0 - 1 + k, 0), din - 1)
            m[i, idx] += w[k]
    return m


def _resample_matrix(din, dout):
    """Row operator: lanczos prefilter (only if dout < din, with reflect pad)
    followed by bicubic interpolation (align_corners=True)."""
    mat = _bicubic_matrix(din, dout, align_corners=True)
    if dout < din:
        kernel = _lanczos_np(_ramp_np(dout / din, 2), 2)
        pad = (kernel.shape[0] - 1) // 2
        conv = _conv_matrix(din + 2 * pad, kernel) @ _reflect_matrix(din, pad)
        mat = mat @ conv
    return mat.astype(np.float32)


# ----------------------------------------------------------------------------
# Single fused Pallas kernel
# ----------------------------------------------------------------------------
def _fused_kernel(a_ref, a2_ref, r_ref, q_ref, txt_ref,
                  cut_ref, dist_ref, feat_ref):
    """Fused MakeCutouts + feature projection + spherical chord distance.

    a_ref    : (n*c, H*W)       image, one flattened slab per (batch, channel)
    a2_ref   : (n, c*H*W)       image, one flattened row per batch element
    r_ref    : (K, H*W, cs*cs)  per-cutout pad+crop+resample operators
    q_ref    : (K, c*H*W, D)    per-cutout pad+crop+resample+projection ops
    txt_ref  : (M, D)           text features
    cut_ref  : (K*n*c, cs*cs)   cutouts (MakeCutouts output, lane-dense 64)
    dist_ref : (K*n, M)         ||normalize(img_feat) - normalize(txt_feat)||
    feat_ref : (K*n, D)         VMEM scratch for the image features
    """
    a = a_ref[...]
    a2 = a2_ref[...]
    k = r_ref.shape[0]        # cutouts handled in this grid step (static)
    nc = a_ref.shape[0]
    n = a2_ref.shape[0]
    for j in range(k):        # static unroll: two MXU matmuls per cutout
        cut_ref[j * nc:(j + 1) * nc, :] = jnp.dot(
            a, r_ref[j], preferred_element_type=jnp.float32)
        feat_ref[j * n:(j + 1) * n, :] = jnp.dot(
            a2, q_ref[j], preferred_element_type=jnp.float32)
    feats = feat_ref[...]                                     # (K*n, D)
    # F.normalize(x, dim=-1): x / max(||x||_2, 1e-12)
    fn = feats / jnp.maximum(
        jnp.sqrt(jnp.sum(feats * feats, axis=-1, keepdims=True)), 1e-12)
    t = txt_ref[...]
    tn = t / jnp.maximum(
        jnp.sqrt(jnp.sum(t * t, axis=-1, keepdims=True)), 1e-12)
    # For unit vectors ||a - b|| == sqrt(2 - 2 a.b); clamp against round-off.
    cos = lax.dot_general(fn, tn, (((1,), (1,)), ((), ())),
                          preferred_element_type=jnp.float32)
    dist_ref[...] = jnp.sqrt(jnp.clip(2.0 - 2.0 * cos, 0.0, 4.0))


# ----------------------------------------------------------------------------
# Module equivalent
# ----------------------------------------------------------------------------
class CLIPLossPallas:
    def __init__(self, num_prompts=2, feat_dim=64, cut_size=8, cutn=8,
                 channels=3, key=None):
        if key is None:
            key = jax.random.PRNGKey(0)
        k_txt, k_w = jax.random.split(key)
        self.cut_size = cut_size
        self.cutn = cutn
        self.channels = channels
        self.feat_dim = feat_dim
        # TODO(synk): deterministic stand-ins for clip.encode_text and the
        # CLIP image encoder (no checkpoint loading allowed).
        self.text_features = jax.random.normal(
            k_txt, (num_prompts, feat_dim), jnp.float32)
        fan_in = channels * cut_size * cut_size
        self.w_img = jax.random.normal(
            k_w, (fan_in, feat_dim), jnp.float32) / math.sqrt(fan_in)
        self._w_img_np = np.asarray(self.w_img, dtype=np.float32)
        self._op_cache = {}

    # -- trace-time construction of the folded per-cutout operators ----------
    def _operators(self, h, w):
        """R[ch]: (h*w, cs*cs)  zero-pad + crop + lanczos + bicubic acting on
                  the *unpadded* image (pad pixels are zero, so their operator
                  columns are simply dropped).
           Q[ch]: (c*h*w, D)    R[ch] folded with the image projection w_img:
                  cropped pixels -> image features in one matmul."""
        if (h, w) in self._op_cache:
            return self._op_cache[(h, w)]
        cs, cutn, C, D = self.cut_size, self.cutn, self.channels, self.feat_dim
        pad = h // 4                       # T.Pad(img.shape[2] // 4, fill=0)
        sy, sx = h + 2 * pad, w + 2 * pad
        max_size = min(sx, sy)
        # TODO(synk): deterministic cutout size/offsets in place of randomness.
        size = max(int(max_size * 0.8), cs)
        m_crop = _resample_matrix(size, cs)      # (cs, size)
        m_full_h = _resample_matrix(sy, cs)      # (cs, sy)
        m_full_w = _resample_matrix(sx, cs)      # (cs, sx)
        hw = h * w
        R = np.zeros((cutn, hw, cs * cs), np.float32)
        Q = np.zeros((cutn, C * hw, D), np.float32)
        for ch in range(cutn):
            if ch > cutn - cutn // 4:                    # full-frame cutout
                mh_pad, mw_pad = m_full_h, m_full_w
            else:                                        # deterministic crop
                oy = (ch * 3) % (sy - size + 1)
                ox = (ch * 5) % (sx - size + 1)
                mh_pad = np.zeros((cs, sy), np.float32)
                mw_pad = np.zeros((cs, sx), np.float32)
                mh_pad[:, oy:oy + size] = m_crop
                mw_pad[:, ox:ox + size] = m_crop
            mh = mh_pad[:, pad:pad + h]    # drop the zero-pad columns
            mw = mw_pad[:, pad:pad + w]
            r = np.kron(mh, mw).T.astype(np.float32)     # (h*w, cs*cs)
            R[ch] = r
            for ci in range(C):                          # fold the projection
                Q[ch, ci * hw:(ci + 1) * hw] = (
                    r @ self._w_img_np[ci * cs * cs:(ci + 1) * cs * cs])
        ops = (jnp.asarray(R), jnp.asarray(Q))
        self._op_cache[(h, w)] = ops
        return ops

    # -- fused forward (one pallas_call) --------------------------------------
    def _fused(self, img):
        n, C, h, w = img.shape
        assert C == self.channels
        cs, cutn, D = self.cut_size, self.cutn, self.feat_dim
        M = self.text_features.shape[0]
        R, Q = self._operators(h, w)
        hw = h * w
        a = img.reshape(n * C, hw).astype(jnp.float32)
        a2 = img.reshape(n, C * hw).astype(jnp.float32)
        # Two-way "parallel" split over cutouts so v7x's two TensorCores each
        # take half; only when the resulting block sublane dims stay 8-aligned.
        split = 2 if (cutn % 2 == 0
                      and ((cutn // 2) * n) % 8 == 0
                      and ((cutn // 2) * n * C) % 8 == 0) else 1
        k = cutn // split
        cut_flat, dist = pl.pallas_call(
            _fused_kernel,
            out_shape=(
                jax.ShapeDtypeStruct((cutn * n * C, cs * cs), jnp.float32),
                jax.ShapeDtypeStruct((cutn * n, M), jnp.float32),
            ),
            grid=(split,),
            in_specs=[
                pl.BlockSpec((n * C, hw), lambda g: (0, 0)),
                pl.BlockSpec((n, C * hw), lambda g: (0, 0)),
                pl.BlockSpec((k, hw, cs * cs), lambda g: (g, 0, 0)),
                pl.BlockSpec((k, C * hw, D), lambda g: (g, 0, 0)),
                pl.BlockSpec((M, D), lambda g: (0, 0)),
            ],
            out_specs=(
                pl.BlockSpec((k * n * C, cs * cs), lambda g: (g, 0)),
                pl.BlockSpec((k * n, M), lambda g: (g, 0)),
            ),
            scratch_shapes=[pltpu.VMEM((k * n, D), jnp.float32)],
            compiler_params=pltpu.CompilerParams(
                dimension_semantics=("parallel",)),
        )(a, a2, R, Q, self.text_features)
        cutouts = cut_flat.reshape(cutn * n, C, cs, cs)
        return cutouts, dist

    # -- MakeCutouts.forward equivalent ---------------------------------------
    def make_cutouts(self, img):
        return self._fused(img)[0]

    # -- full CLIP-loss forward -----------------------------------------------
    def __call__(self, img):
        _, d = self._fused(img)
        # TODO(synk): arcsin has no Mosaic lowering rule; the tiny [Ncut, M]
        # elementwise tail + mean stay in plain JAX (clamp guards round-off).
        dist = 2.0 * jnp.square(jnp.arcsin(jnp.clip(d * 0.5, -1.0, 1.0)))
        return dist.mean()


if __name__ == "__main__":
    key = jax.random.PRNGKey(0)
    k_img, k_params = jax.random.split(key)
    # layout: NCHW input image batch, small shapes: batch=2, C=3, H=W=16
    img = jax.random.normal(k_img, (2, 3, 16, 16), jnp.float32)
    mod = CLIPLossPallas(num_prompts=2, feat_dim=64, cut_size=8, cutn=8,
                         channels=3, key=k_params)

    cutouts, dists = mod._fused(img)     # one fused Pallas call
    loss = mod(img)
    jax.block_until_ready((cutouts, dists, loss))

    assert cutouts.shape == (mod.cutn * img.shape[0], img.shape[1],
                             mod.cut_size, mod.cut_size)
    assert bool(jnp.all(jnp.isfinite(cutouts)))
    assert bool(jnp.isfinite(loss))

    # Pure-JAX reference of the deterministic MakeCutouts path (crop on the
    # zero-padded image + two-step separable resample) validating the folded
    # Kronecker operators used inside the kernel.
    pad = img.shape[2] // 4
    padded = jnp.pad(img, ((0, 0), (0, 0), (pad, pad), (pad, pad)))
    sy, sx = padded.shape[2], padded.shape[3]
    size = max(int(min(sy, sx) * 0.8), mod.cut_size)
    m_crop = jnp.asarray(_resample_matrix(size, mod.cut_size))
    m_full_h = jnp.asarray(_resample_matrix(sy, mod.cut_size))
    m_full_w = jnp.asarray(_resample_matrix(sx, mod.cut_size))
    ref = []
    for ch in range(mod.cutn):
        if ch > mod.cutn - mod.cutn // 4:
            x, mh, mw = padded, m_full_h, m_full_w
        else:
            oy = (ch * 3) % (sy - size + 1)
            ox = (ch * 5) % (sx - size + 1)
            x = padded[:, :, oy:oy + size, ox:ox + size]
            mh, mw = m_crop, m_crop
        ref.append(jnp.einsum('oh,bchw,pw->bcop', mh, x, mw))
    ref = jnp.concatenate(ref, axis=0)
    assert bool(jnp.allclose(cutouts, ref, atol=1e-3, rtol=1e-3))

    print("KERNEL_OK")
</pallas_src>

<mosaic_0001>
module attributes {stable_mosaic.version = 11 : i64} {
  func.func @_fused_kernel(%arg0: i32, %arg1: memref<6x256xf32, #tpu.memory_space<vmem>>, %arg2: memref<2x768xf32, #tpu.memory_space<vmem>>, %arg3: memref<4x256x64xf32, #tpu.memory_space<vmem>>, %arg4: memref<4x768x64xf32, #tpu.memory_space<vmem>>, %arg5: memref<2x64xf32, #tpu.memory_space<vmem>>, %arg6: memref<24x64xf32, #tpu.memory_space<vmem>>, %arg7: memref<8x2xf32, #tpu.memory_space<vmem>>, %arg8: memref<8x64xf32, #tpu.memory_space<vmem>>) attributes {dimension_semantics = [#tpu.dimension_semantics<parallel>], iteration_bounds = array<i64: 2>, scalar_prefetch = 0 : i64, scratch_operands = 1 : i64, tpu.core_type = #tpu.core_type<tc>, window_params = [{pipeline_mode = #tpu.pipeline_mode<synchronous>, transform_indices = @transform_0, window_bounds = array<i64: 6, 256>}, {pipeline_mode = #tpu.pipeline_mode<synchronous>, transform_indices = @transform_1, window_bounds = array<i64: 2, 768>}, {transform_indices = @transform_2, window_bounds = array<i64: 4, 256, 64>}, {transform_indices = @transform_3, window_bounds = array<i64: 4, 768, 64>}, {pipeline_mode = #tpu.pipeline_mode<synchronous>, transform_indices = @transform_4, window_bounds = array<i64: 2, 64>}, {transform_indices = @transform_5, window_bounds = array<i64: 24, 64>}, {transform_indices = @transform_6, window_bounds = array<i64: 8, 2>}]} {
    %c0 = arith.constant 0 : index
    %c0_0 = arith.constant 0 : index
    %0 = vector.load %arg1[%c0, %c0_0] : memref<6x256xf32, #tpu.memory_space<vmem>>, vector<6x256xf32>
    %c0_1 = arith.constant 0 : index
    %c0_2 = arith.constant 0 : index
    %1 = vector.load %arg2[%c0_1, %c0_2] : memref<2x768xf32, #tpu.memory_space<vmem>>, vector<2x768xf32>
    %c0_3 = arith.constant 0 : index
    %c0_4 = arith.constant 0 : index
    %c0_5 = arith.constant 0 : index
    %2 = vector.load %arg3[%c0_3, %c0_4, %c0_5] : memref<4x256x64xf32, #tpu.memory_space<vmem>>, vector<1x256x64xf32>
    %3 = vector.shape_cast %2 : vector<1x256x64xf32> to vector<256x64xf32>
    %cst = arith.constant dense<0.000000e+00> : vector<6x64xf32>
    %4 = tpu.matmul %0, %3, %cst {dimension_numbers = #tpu.dot_dimension_numbers<[1], [0], [0], [1], [0, 0, 1, 1], [], []>} : vector<6x256xf32>, vector<256x64xf32>, vector<6x64xf32> -> vector<6x64xf32>
    %c0_6 = arith.constant 0 : index
    %c0_7 = arith.constant 0 : index
    %5 = vector.load %arg6[%c0_6, %c0_7] : memref<24x64xf32, #tpu.memory_space<vmem>>, vector<6x64xf32>
    tpu.vector_store %arg6[%c0_6, %c0_7], %4 {strides = array<i32>} : memref<24x64xf32, #tpu.memory_space<vmem>>, vector<6x64xf32>,
    %c0_8 = arith.constant 0 : index
    %c0_9 = arith.constant 0 : index
    %c0_10 = arith.constant 0 : index
    %6 = vector.load %arg4[%c0_8, %c0_9, %c0_10] : memref<4x768x64xf32, #tpu.memory_space<vmem>>, vector<1x768x64xf32>
    %7 = vector.shape_cast %6 : vector<1x768x64xf32> to vector<768x64xf32>
    %cst_11 = arith.constant dense<0.000000e+00> : vector<2x64xf32>
    %8 = tpu.matmul %1, %7, %cst_11 {dimension_numbers = #tpu.dot_dimension_numbers<[1], [0], [0], [1], [0, 0, 1, 1], [], []>} : vector<2x768xf32>, vector<768x64xf32>, vector<2x64xf32> -> vector<2x64xf32>
    %c0_12 = arith.constant 0 : index
    %c0_13 = arith.constant 0 : index
    %9 = vector.load %arg8[%c0_12, %c0_13] : memref<8x64xf32, #tpu.memory_space<vmem>>, vector<2x64xf32>
    tpu.vector_store %arg8[%c0_12, %c0_13], %8 {strides = array<i32>} : memref<8x64xf32, #tpu.memory_space<vmem>>, vector<2x64xf32>,
    %c1 = arith.constant 1 : index
    %c0_14 = arith.constant 0 : index
    %c0_15 = arith.constant 0 : index
    %10 = vector.load %arg3[%c1, %c0_14, %c0_15] : memref<4x256x64xf32, #tpu.memory_space<vmem>>, vector<1x256x64xf32>
    %11 = vector.shape_cast %10 : vector<1x256x64xf32> to vector<256x64xf32>
    %cst_16 = arith.constant dense<0.000000e+00> : vector<6x64xf32>
    %12 = tpu.matmul %0, %11, %cst_16 {dimension_numbers = #tpu.dot_dimension_numbers<[1], [0], [0], [1], [0, 0, 1, 1], [], []>} : vector<6x256xf32>, vector<256x64xf32>, vector<6x64xf32> -> vector<6x64xf32>
    %c6 = arith.constant 6 : index
    %c0_17 = arith.constant 0 : index
    %13 = vector.load %arg6[%c6, %c0_17] : memref<24x64xf32, #tpu.memory_space<vmem>>, vector<6x64xf32>
    tpu.vector_store %arg6[%c6, %c0_17], %12 {strides = array<i32>} : memref<24x64xf32, #tpu.memory_space<vmem>>, vector<6x64xf32>,
    %c1_18 = arith.constant 1 : index
    %c0_19 = arith.constant 0 : index
    %c0_20 = arith.constant 0 : index
    %14 = vector.load %arg4[%c1_18, %c0_19, %c0_20] : memref<4x768x64xf32, #tpu.memory_space<vmem>>, vector<1x768x64xf32>
    %15 = vector.shape_cast %14 : vector<1x768x64xf32> to vector<768x64xf32>
    %cst_21 = arith.constant dense<0.000000e+00> : vector<2x64xf32>
    %16 = tpu.matmul %1, %15, %cst_21 {dimension_numbers = #tpu.dot_dimension_numbers<[1], [0], [0], [1], [0, 0, 1, 1], [], []>} : vector<2x768xf32>, vector<768x64xf32>, vector<2x64xf32> -> vector<2x64xf32>
    %c2 = arith.constant 2 : index
    %c0_22 = arith.constant 0 : index
    %17 = vector.load %arg8[%c2, %c0_22] : memref<8x64xf32, #tpu.memory_space<vmem>>, vector<2x64xf32>
    tpu.vector_store %arg8[%c2, %c0_22], %16 {strides = array<i32>} : memref<8x64xf32, #tpu.memory_space<vmem>>, vector<2x64xf32>,
    %c2_23 = arith.constant 2 : index
    %c0_24 = arith.constant 0 : index
    %c0_25 = arith.constant 0 : index
    %18 = vector.load %arg3[%c2_23, %c0_24, %c0_25] : memref<4x256x64xf32, #tpu.memory_space<vmem>>, vector<1x256x64xf32>
    %19 = vector.shape_cast %18 : vector<1x256x64xf32> to vector<256x64xf32>
    %cst_26 = arith.constant dense<0.000000e+00> : vector<6x64xf32>
    %20 = tpu.matmul %0, %19, %cst_26 {dimension_numbers = #tpu.dot_dimension_numbers<[1], [0], [0], [1], [0, 0, 1, 1], [], []>} : vector<6x256xf32>, vector<256x64xf32>, vector<6x64xf32> -> vector<6x64xf32>
    %c12 = arith.constant 12 : index
    %c0_27 = arith.constant 0 : index
    %21 = vector.load %arg6[%c12, %c0_27] : memref<24x64xf32, #tpu.memory_space<vmem>>, vector<6x64xf32>
    tpu.vector_store %arg6[%c12, %c0_27], %20 {strides = array<i32>} : memref<24x64xf32, #tpu.memory_space<vmem>>, vector<6x64xf32>,
    %c2_28 = arith.constant 2 : index
    %c0_29 = arith.constant 0 : index
    %c0_30 = arith.constant 0 : index
    %22 = vector.load %arg4[%c2_28, %c0_29, %c0_30] : memref<4x768x64xf32, #tpu.memory_space<vmem>>, vector<1x768x64xf32>
    %23 = vector.shape_cast %22 : vector<1x768x64xf32> to vector<768x64xf32>
    %cst_31 = arith.constant dense<0.000000e+00> : vector<2x64xf32>
    %24 = tpu.matmul %1, %23, %cst_31 {dimension_numbers = #tpu.dot_dimension_numbers<[1], [0], [0], [1], [0, 0, 1, 1], [], []>} : vector<2x768xf32>, vector<768x64xf32>, vector<2x64xf32> -> vector<2x64xf32>
    %c4 = arith.constant 4 : index
    %c0_32 = arith.constant 0 : index
    %25 = vector.load %arg8[%c4, %c0_32] : memref<8x64xf32, #tpu.memory_space<vmem>>, vector<2x64xf32>
    tpu.vector_store %arg8[%c4, %c0_32], %24 {strides = array<i32>} : memref<8x64xf32, #tpu.memory_space<vmem>>, vector<2x64xf32>,
    %c3 = arith.constant 3 : index
    %c0_33 = arith.constant 0 : index
    %c0_34 = arith.constant 0 : index
    %26 = vector.load %arg3[%c3, %c0_33, %c0_34] : memref<4x256x64xf32, #tpu.memory_space<vmem>>, vector<1x256x64xf32>
    %27 = vector.shape_cast %26 : vector<1x256x64xf32> to vector<256x64xf32>
    %cst_35 = arith.constant dense<0.000000e+00> : vector<6x64xf32>
    %28 = tpu.matmul %0, %27, %cst_35 {dimension_numbers = #tpu.dot_dimension_numbers<[1], [0], [0], [1], [0, 0, 1, 1], [], []>} : vector<6x256xf32>, vector<256x64xf32>, vector<6x64xf32> -> vector<6x64xf32>
    %c18 = arith.constant 18 : index
    %c0_36 = arith.constant 0 : index
    %29 = vector.load %arg6[%c18, %c0_36] : memref<24x64xf32, #tpu.memory_space<vmem>>, vector<6x64xf32>
    tpu.vector_store %arg6[%c18, %c0_36], %28 {strides = array<i32>} : memref<24x64xf32, #tpu.memory_space<vmem>>, vector<6x64xf32>,
    %c3_37 = arith.constant 3 : index
    %c0_38 = arith.constant 0 : index
    %c0_39 = arith.constant 0 : index
    %30 = vector.load %arg4[%c3_37, %c0_38, %c0_39] : memref<4x768x64xf32, #tpu.memory_space<vmem>>, vector<1x768x64xf32>
    %31 = vector.shape_cast %30 : vector<1x768x64xf32> to vector<768x64xf32>
    %cst_40 = arith.constant dense<0.000000e+00> : vector<2x64xf32>
    %32 = tpu.matmul %1, %31, %cst_40 {dimension_numbers = #tpu.dot_dimension_numbers<[1], [0], [0], [1], [0, 0, 1, 1], [], []>} : vector<2x768xf32>, vector<768x64xf32>, vector<2x64xf32> -> vector<2x64xf32>
    %c6_41 = arith.constant 6 : index
    %c0_42 = arith.constant 0 : index
    %33 = vector.load %arg8[%c6_41, %c0_42] : memref<8x64xf32, #tpu.memory_space<vmem>>, vector<2x64xf32>
    tpu.vector_store %arg8[%c6_41, %c0_42], %32 {strides = array<i32>} : memref<8x64xf32, #tpu.memory_space<vmem>>, vector<2x64xf32>,
    %c0_43 = arith.constant 0 : index
    %c0_44 = arith.constant 0 : index
    %34 = vector.load %arg8[%c0_43, %c0_44] : memref<8x64xf32, #tpu.memory_space<vmem>>, vector<8x64xf32>
    %35 = arith.mulf %34, %34 : vector<8x64xf32>
    %cst_45 = arith.constant dense<0.000000e+00> : vector<8xf32>
    %36 = vector.multi_reduction <add>, %35, %cst_45 [1] : vector<8x64xf32> to vector<8xf32>
    %37 = vector.shape_cast %36 : vector<8xf32> to vector<8x1xf32>
    %38 = math.sqrt %37 : vector<8x1xf32>
    %cst_46 = arith.constant 9.99999996E-13 : f32
    %39 = vector.broadcast %cst_46 : f32 to vector<8x1xf32>
    %40 = arith.maximumf %38, %39 : vector<8x1xf32>
    %41 = vector.broadcast %40 : vector<8x1xf32> to vector<8x64xf32>
    %42 = arith.divf %34, %41 : vector<8x64xf32>
    %c0_47 = arith.constant 0 : index
    %c0_48 = arith.constant 0 : index
    %43 = vector.load %arg5[%c0_47, %c0_48] : memref<2x64xf32, #tpu.memory_space<vmem>>, vector<2x64xf32>
    %44 = arith.mulf %43, %43 : vector<2x64xf32>
    %cst_49 = arith.constant dense<0.000000e+00> : vector<2xf32>
    %45 = vector.multi_reduction <add>, %44, %cst_49 [1] : vector<2x64xf32> to vector<2xf32>
    %46 = vector.shape_cast %45 : vector<2xf32> to vector<2x1xf32>
    %47 = math.sqrt %46 : vector<2x1xf32>
    %cst_50 = arith.constant 9.99999996E-13 : f32
    %48 = vector.broadcast %cst_50 : f32 to vector<2x1xf32>
    %49 = arith.maximumf %47, %48 : vector<2x1xf32>
    %50 = vector.broadcast %49 : vector<2x1xf32> to vector<2x64xf32>
    %51 = arith.divf %43, %50 : vector<2x64xf32>
    %cst_51 = arith.constant dense<0.000000e+00> : vector<8x2xf32>
    %52 = tpu.matmul %42, %51, %cst_51 {dimension_numbers = #tpu.dot_dimension_numbers<[1], [1], [0], [0], [0, 0, 1, 0], [], []>} : vector<8x64xf32>, vector<2x64xf32>, vector<8x2xf32> -> vector<8x2xf32>
    %cst_52 = arith.constant 2.000000e+00 : f32
    %53 = vector.broadcast %cst_52 : f32 to vector<8x2xf32>
    %54 = arith.mulf %53, %52 : vector<8x2xf32>
    %cst_53 = arith.constant 2.000000e+00 : f32
    %55 = vector.broadcast %cst_53 : f32 to vector<8x2xf32>
    %56 = arith.subf %55, %54 : vector<8x2xf32>
    %cst_54 = arith.constant 0.000000e+00 : f32
    %cst_55 = arith.constant 4.000000e+00 : f32
    %57 = vector.broadcast %cst_54 : f32 to vector<8x2xf32>
    %58 = arith.maximumf %57, %56 : vector<8x2xf32>
    %59 = vector.broadcast %cst_55 : f32 to vector<8x2xf32>
    %60 = arith.minimumf %59, %58 : vector<8x2xf32>
    %61 = math.sqrt %60 : vector<8x2xf32>
    %c0_56 = arith.constant 0 : index
    %c0_57 = arith.constant 0 : index
    %62 = vector.load %arg7[%c0_56, %c0_57] : memref<8x2xf32, #tpu.memory_space<vmem>>, vector<8x2xf32>
    tpu.vector_store %arg7[%c0_56, %c0_57], %61 {strides = array<i32>} : memref<8x2xf32, #tpu.memory_space<vmem>>, vector<8x2xf32>,
    return
  }
  func.func @transform_0(%arg0: i32) -> (i32, i32) {
    %c0_i32 = arith.constant 0 : i32
    %c0_i32_0 = arith.constant 0 : i32
    %c0_i32_1 = arith.constant 0 : i32
    return %c0_i32, %c0_i32_0 : i32, i32
  }
  func.func @transform_1(%arg0: i32) -> (i32, i32) {
    %c0_i32 = arith.constant 0 : i32
    %c0_i32_0 = arith.constant 0 : i32
    %c0_i32_1 = arith.constant 0 : i32
    return %c0_i32, %c0_i32_0 : i32, i32
  }
  func.func @transform_2(%arg0: i32) -> (i32, i32, i32) {
    %c0_i32 = arith.constant 0 : i32
    %c0_i32_0 = arith.constant 0 : i32
    %c0_i32_1 = arith.constant 0 : i32
    return %arg0, %c0_i32, %c0_i32_0 : i32, i32, i32
  }
  func.func @transform_3(%arg0: i32) -> (i32, i32, i32) {
    %c0_i32 = arith.constant 0 : i32
    %c0_i32_0 = arith.constant 0 : i32
    %c0_i32_1 = arith.constant 0 : i32
    return %arg0, %c0_i32, %c0_i32_0 : i32, i32, i32
  }
  func.func @transform_4(%arg0: i32) -> (i32, i32) {
    %c0_i32 = arith.constant 0 : i32
    %c0_i32_0 = arith.constant 0 : i32
    %c0_i32_1 = arith.constant 0 : i32
    return %c0_i32, %c0_i32_0 : i32, i32
  }
  func.func @transform_5(%arg0: i32) -> (i32, i32) {
    %c0_i32 = arith.constant 0 : i32
    %c0_i32_0 = arith.constant 0 : i32
    return %arg0, %c0_i32 : i32, i32
  }
  func.func @transform_6(%arg0: i32) -> (i32, i32) {
    %c0_i32 = arith.constant 0 : i32
    %c0_i32_0 = arith.constant 0 : i32
    return %arg0, %c0_i32 : i32, i32
  }
}

</mosaic_0001>

<bundles_post_ra>
// kernel: tpu_custom_call.1
= control target key start
LH: loop header
LB: loop body
LE: loop exit
PB: predicated region body
PF: predicated region fallthrough
CT: control target
= control target key end

     0   :  { %12 = vsyncpa [#allocation4], 0  ;;  %s4607_s0 = inlined_call_operand.vmem [shape: f32[6,256], index: 0, kind: input, shape index: {}]   ;;  %s4608_s1 = inlined_call_operand.vmem [shape: f32[2,768], index: 1, kind: input, shape index: {}]   ;;  %s4609_s2 = inlined_call_operand.vmem [shape: f32[8,256,64], index: 2, kind: input, shape index: {}]   ;;  %s4610_s3 = inlined_call_operand.vmem [shape: f32[8,768,64], index: 3, kind: input, shape index: {}]   ;;  %s4611_s4 = inlined_call_operand.vmem [shape: f32[2,64], index: 4, kind: input, shape index: {}]   ;;  %s4612_s5 = inlined_call_operand.hbm [shape: f32[48,64], index: 5, kind: output, shape index: {0}]   ;;  %s4613_s6 = inlined_call_operand.vmem [shape: f32[16,2], index: 6, kind: output, shape index: {1}]  }
   0x1   :  { %14 = vsyncpa [#allocation4 + $0x1], 0  ;;  %s3862_s21 = smov 0   ;;  %s3864_s22 = smov 0  }
   0x2   :  { %s3866_s23 = smov 0   ;;  %s3868_s24 = smov 0  }
   0x3 LB: > { %s3883_s25 = sadd.s32 4294967295, %s3819_s24   ;;  %s2216_s26 = sadd.s32 4294967294, %s3819_s24   ;;  %s3819_s24 = sphi %s3868_s24, %s4619_s24   ;;  %s3815_s23 = sphi %s3866_s23, %s4618_s23   ;;  %s3811_s22 = sphi %s3864_s22, %s4617_s22   ;;  %s3807_s21 = sphi %s3862_s21, %s4616_s21  }
   0x4   : > { %s3887_s27 = sadd.s32 1, %s3819_s24   ;;  %s142_s28 = sadd.s32 1, %s3815_s23 }
   0x5   : > { %s139_s29 = ssub.s32 %s3819_s24, %s3887_s27  ;;  %p152_p0 = scmp.ne.s32.totalorder %s3815_s23, %s3811_s22 }
   0x6   : > { %p140_p1 = scmp.eq.s32.totalorder %s139_s29, 0  ;;  %p153_p2 = scmp.eq.s32.totalorder %s3883_s25, 1 }
   0x7   : > { %p158_p3 = scmp.ne.s32.totalorder %s3811_s22, %s3807_s21  ;;  %p159_p4 = scmp.eq.s32.totalorder %s2216_s26, 1 }
   0x8   : > { %s3898_s30 = scalar_select %p140_p1, %s3815_s23, %s142_s28  }
   0x9   : > { %p3900_p5 = por %p153_p2, %p152_p0  ;;  %p3904_p6 = por %p159_p4, %p158_p3 }
   0xa   : > { %p2219_p7 = scmp.ge.s32.totalorder %s3819_s24, 1  ;;  %p232_p8 = scmp.lt.s32.totalorder %s3819_s24, 3 }
   0xc   : > { %p233_p9 = pnand %p2219_p7, %p232_p8 }
   0xd   : > { %s2220_s9 = sshll.u32 (!%p233_p9), %s3883_s25, 2  ;;  %v3914_v0 = vld [vmem:[%s4607_s0 + $0x8] sm:$0x3f] (!%p233_p9)  ;;  %v502_v1 = vlaneseq (!%p233_p9)  ;;  %v3821_v2 = vmov (!%p233_p9), 1983009808   ;;  %v3920_v6 = vld [vmem:[%s4608_s1] sm:$0xff] (!%p233_p9) }
   0xe   : > { %236 = sbr.rel (%p233_p9) target bundleno = 921 (0x399), region = 40  ;;  %p274_p10 = scmp.lt.s32.totalorder (!%p233_p9), %s2220_s9, 7  ;;  %392 = vmatprep.mubr.f32.mxu0 (!%p233_p9), %v3914_v0  ;;  %v500_v3 = vunpack.c.l.s4 (!%p233_p9), %v3821_v2  ;;  %vm398_vm0 = vcmask (!%p233_p9), 521216   ;;  %vm739_vm1 = vcmask (!%p233_p9), 517120   ;;  %vm1979_vm2 = vcmask (!%p233_p9), 523264  }
   0xf   : > { %v503_v4 = vshrl.u32 (!%p233_p9), %v502_v1, 7  ;;  %s264_s17 = sand.u32 (!%p233_p9), 1, %s3811_s22   ;;  %vm3823_vm5 = vmmov (!%p233_p9), 0   ;;  %s2617_s29 = smul.u32 (!%p233_p9), 384, %s3883_s25 }
  0x10   : > { %v501_v5 = vunpack.c.0.s8 (!%p233_p9), %v500_v3  ;;  %s3824_s14 = smov (!%p233_p9), [#allocation3]  }
  0x11   : > { %s4557_s11 = scalar_lea.hbm (!%p233_p9), %s4612_s5, %s2617_s29  ;;  %s3761_s15 = sshll.u32 (!%p233_p9), %s3824_s14, 4  ;;  %s3762_s15 = int_to_ptr.vmem [resolvable:$false] %s3761_s15 }
  0x12   : > { %v3927_v7 = vsub.s32 (!%p233_p9), %v501_v5, %v503_v4  ;;  %s3763_s16 = scalar_lea.vmem (!%p233_p9), %s3762_s15, 768 }
  0x14   : > { %v3942_v15 = vrot.slane (!%p233_p9), %v3920_v6, %v3927_v7 }
  0x15   : > { %s4621_s9 = smov (!%p274_p10, %s2220_s9), 7 }
  0x16   : > { %s2616_s12 = sshll.u32 %s4621_s9, 8  ;;  %s3698_s13 = smul.u32 768, %s4621_s9  ;;  %v3952_v25 = vcombine.high %v3942_v15, %v3942_v15 }
  0x17   : > { %s3925_s18 = scalar_lea.vmem %s4609_s2, %s2616_s12  ;;  %s4561_s12 = scalar_lea.sflag [#allocation4], %s264_s17 }
  0x18   : > { %s3932_s26 = scalar_lea.vmem %s4610_s3, %s3698_s13  ;;  %v312_v8 = vld [vmem:[%s3925_s18 + $0x80] sm:$0xff]  ;;  %v313_v9 = vld [vmem:[%s3925_s18 + $0x88] sm:$0xff]  ;;  %v314_v20 = vld [vmem:[%s3925_s18 + $0x90] sm:$0xff]  ;;  %593 = vmatprep.mubr.f32.mxu1 %v3952_v25 }
  0x19   : > { %v296_v10 = vld [vmem:[%s3925_s18] sm:$0xff]  ;;  %v3185_v11 = vpack.c.bf16 %v313_v9, %v312_v8  ;;  %v297_v12 = vld [vmem:[%s3925_s18 + $0x8] sm:$0xff]  ;;  %v315_v22 = vld [vmem:[%s3925_s18 + $0x98] sm:$0xff] }
  0x1a   : > { %v416_v13 = vld [vmem:[%s3932_s26 + $0x80] sm:$0xff]  ;;  %v417_v14 = vld [vmem:[%s3932_s26 + $0x88] sm:$0xff]  ;;  %v3187_v16 = vpack.c.bf16 %v297_v12, %v296_v10  ;;  %v298_v23 = vld [vmem:[%s3925_s18 + $0x10] sm:$0xff]  ;;  %v3189_v26 = vpack.c.bf16 %v315_v22, %v314_v20 }
  0x1b   : > { %v3217_v17 = vpack.c.bf16 %v417_v14, %v416_v13  ;;  %v400_v18 = vld [vmem:[%s3932_s26] sm:$0xff]  ;;  %v401_v19 = vld [vmem:[%s3932_s26 + $0x8] sm:$0xff]  ;;  %3186 = vmatprep.subr.bf16.mxu0 %v3185_v11  ;;  %v299_v24 = vld [vmem:[%s3925_s18 + $0x18] sm:$0xff] }
  0x1c   : > { %v3219_v21 = vpack.c.bf16 %v401_v19, %v400_v18  ;;  %3188 = vmatpush3.bf16.msra.mxu0 %v3187_v16  ;;  %v3191_v27 = vpack.c.bf16 %v299_v24, %v298_v23  ;;  %v418_v28 = vld [vmem:[%s3932_s26 + $0x90] sm:$0xff]  ;;  %v419_v29 = vld [vmem:[%s3932_s26 + $0x98] sm:$0xff]  ;;  %v316_v33 = vld [vmem:[%s3925_s18 + $0xa0] sm:$0xff] }
  0x1d   : > { %3218 = vmatprep.subr.bf16.mxu1 %v3217_v17  ;;  %v402_v30 = vld [vmem:[%s3932_s26 + $0x10] sm:$0xff]  ;;  %v3221_v31 = vpack.c.bf16 %v419_v29, %v418_v28  ;;  %v403_v32 = vld [vmem:[%s3932_s26 + $0x18] sm:$0xff]  ;;  %v317_v34 = vld [vmem:[%s3925_s18 + $0xa8] sm:$0xff]  ;;  %3190 = vmatprep.subr.bf16.mxu0 %v3189_v26 }
  0x1e   : > { %3220 = vmatpush3.bf16.msra.mxu1 %v3219_v21  ;;  %v3223_v35 = vpack.c.bf16 %v403_v32, %v402_v30  ;;  %v3193_v36 = vpack.c.bf16 %v317_v34, %v316_v33  ;;  %v300_v37 = vld [vmem:[%s3925_s18 + $0x20] sm:$0xff]  ;;  %v301_v38 = vld [vmem:[%s3925_s18 + $0x28] sm:$0xff]  ;;  %v318_v45 = vld [vmem:[%s3925_s18 + $0xb0] sm:$0xff] }
  0x1f   : > { %v420_v39 = vld [vmem:[%s3932_s26 + $0xa0] sm:$0xff]  ;;  %3222 = vmatprep.subr.bf16.mxu1 %v3221_v31  ;;  %v421_v40 = vld [vmem:[%s3932_s26 + $0xa8] sm:$0xff]  ;;  %v3195_v43 = vpack.c.bf16 %v301_v38, %v300_v37  ;;  %v319_v46 = vld [vmem:[%s3925_s18 + $0xb8] sm:$0xff] }
  0x20   : > { %v404_v41 = vld [vmem:[%s3932_s26 + $0x20] sm:$0xff]  ;;  %v405_v42 = vld [vmem:[%s3932_s26 + $0x28] sm:$0xff]  ;;  %3192 = vmatpush3.bf16.msra.mxu0 %v3191_v27  ;;  %v3225_v44 = vpack.c.bf16 %v421_v40, %v420_v39  ;;  %v302_v47 = vld [vmem:[%s3925_s18 + $0x30] sm:$0xff]  ;;  %v3197_v49 = vpack.c.bf16 %v319_v46, %v318_v45 }
  0x21   : > { %3194 = vmatprep.subr.bf16.mxu0 %v3193_v36  ;;  %v3227_v48 = vpack.c.bf16 %v405_v42, %v404_v41  ;;  %v303_v50 = vld [vmem:[%s3925_s18 + $0x38] sm:$0xff]  ;;  %v422_v51 = vld [vmem:[%s3932_s26 + $0xb0] sm:$0xff]  ;;  %v320_v56 = vld [vmem:[%s3925_s18 + $0xc0] sm:$0xff] }
  0x22   : > { %3224 = vmatpush3.bf16.msra.mxu1 %v3223_v35  ;;  %v423_v52 = vld [vmem:[%s3932_s26 + $0xb8] sm:$0xff]  ;;  %v406_v54 = vld [vmem:[%s3932_s26 + $0x30] sm:$0xff]  ;;  %v321_v57 = vld [vmem:[%s3925_s18 + $0xc8] sm:$0xff]  ;;  %v3199_v58 = vpack.c.bf16 %v303_v50, %v302_v47  ;;  %v498_v47 = vcombine.high %v3920_v6, %v3920_v6 }
  0x23   : > { %3226 = vmatprep.subr.bf16.mxu1 %v3225_v44  ;;  %v3229_v53 = vpack.c.bf16 %v423_v52, %v422_v51  ;;  %v407_v55 = vld [vmem:[%s3932_s26 + $0x38] sm:$0xff]  ;;  %v424_v59 = vld [vmem:[%s3932_s26 + $0xc0] sm:$0xff]  ;;  %v425_v60 = vld [vmem:[%s3932_s26 + $0xc8] sm:$0xff]  ;;  %v3201_v62 = vpack.c.bf16 %v321_v57, %v320_v56 }
  0x24   : > { %3196 = vmatpush3.bf16.msra.mxu0 %v3195_v43  ;;  %v3231_v61 = vpack.c.bf16 %v407_v55, %v406_v54  ;;  %v304_v63 = vld [vmem:[%s3925_s18 + $0x40] sm:$0xff]  ;;  %v305_v1 = vld [vmem:[%s3925_s18 + $0x48] sm:$0xff]  ;;  %v3233_v3 = vpack.c.bf16 %v425_v60, %v424_v59  ;;  %v322_v5 = vld [vmem:[%s3925_s18 + $0xd0] sm:$0xff]  ;;  %v4020_v59 = vrot.slane %v498_v47, %v3927_v7 }
  0x25   : > { %3198 = vmatprep.subr.bf16.mxu0 %v3197_v49  ;;  %v408_v2 = vld [vmem:[%s3932_s26 + $0x40] sm:$0xff]  ;;  %v409_v4 = vld [vmem:[%s3932_s26 + $0x48] sm:$0xff]  ;;  %v323_v8 = vld [vmem:[%s3925_s18 + $0xd8] sm:$0xff]  ;;  %v3203_v11 = vpack.c.bf16 %v305_v1, %v304_v63 }
  0x26   : > { %3228 = vmatpush3.bf16.msra.mxu1 %v3227_v48  ;;  %v426_v9 = vld [vmem:[%s3932_s26 + $0xd0] sm:$0xff]  ;;  %v427_v10 = vld [vmem:[%s3932_s26 + $0xd8] sm:$0xff]  ;;  %v3235_v12 = vpack.c.bf16 %v409_v4, %v408_v2  ;;  %v3205_v13 = vpack.c.bf16 %v323_v8, %v322_v5  ;;  %v324_v20 = vld [vmem:[%s3925_s18 + $0xe0] sm:$0xff] }
  0x27   : > { %3230 = vmatprep.subr.bf16.mxu1 %v3229_v53  ;;  %v306_v14 = vld [vmem:[%s3925_s18 + $0x50] sm:$0xff]  ;;  %v307_v16 = vld [vmem:[%s3925_s18 + $0x58] sm:$0xff]  ;;  %v3237_v18 = vpack.c.bf16 %v427_v10, %v426_v9  ;;  %v325_v21 = vld [vmem:[%s3925_s18 + $0xe8] sm:$0xff] }
  0x28   : > { %3200 = vmatpush3.bf16.msra.mxu0 %v3199_v58  ;;  %v410_v17 = vld [vmem:[%s3932_s26 + $0x50] sm:$0xff]  ;;  %v411_v19 = vld [vmem:[%s3932_s26 + $0x58] sm:$0xff]  ;;  %v428_v22 = vld [vmem:[%s3932_s26 + $0xe0] sm:$0xff]  ;;  %v3207_v24 = vpack.c.bf16 %v307_v16, %v306_v14  ;;  %v3209_v27 = vpack.c.bf16 %v325_v21, %v324_v20 }
  0x29   : > { %3202 = vmatprep.subr.bf16.mxu0 %v3201_v62  ;;  %v429_v23 = vld [vmem:[%s3932_s26 + $0xe8] sm:$0xff]  ;;  %v3239_v26 = vpack.c.bf16 %v411_v19, %v410_v17  ;;  %v308_v28 = vld [vmem:[%s3925_s18 + $0x60] sm:$0xff]  ;;  %v326_v33 = vld [vmem:[%s3925_s18 + $0xf0] sm:$0xff] }
  0x2a   : > { %3232 = vmatpush3.bf16.msra.mxu1 %v3231_v61  ;;  %v309_v29 = vld [vmem:[%s3925_s18 + $0x68] sm:$0xff]  ;;  %v412_v30 = vld [vmem:[%s3932_s26 + $0x60] sm:$0xff]  ;;  %v3241_v31 = vpack.c.bf16 %v429_v23, %v428_v22  ;;  %v327_v34 = vld [vmem:[%s3925_s18 + $0xf8] sm:$0xff] }
  0x2b   : > { %3234 = vmatprep.subr.bf16.mxu1 %v3233_v3  ;;  %v413_v32 = vld [vmem:[%s3932_s26 + $0x68] sm:$0xff]  ;;  %v430_v35 = vld [vmem:[%s3932_s26 + $0xf0] sm:$0xff]  ;;  %v431_v36 = vld [vmem:[%s3932_s26 + $0xf8] sm:$0xff]  ;;  %v3211_v37 = vpack.c.bf16 %v309_v29, %v308_v28  ;;  %v3213_v39 = vpack.c.bf16 %v327_v34, %v326_v33 }
  0x2c   : > { %3204 = vmatpush3.bf16.msra.mxu0 %v3203_v11  ;;  %v3243_v38 = vpack.c.bf16 %v413_v32, %v412_v30  ;;  %v310_v40 = vld [vmem:[%s3925_s18 + $0x70] sm:$0xff]  ;;  %v311_v41 = vld [vmem:[%s3925_s18 + $0x78] sm:$0xff]  ;;  %v3245_v43 = vpack.c.bf16 %v431_v36, %v430_v35  ;;  %v448_v45 = vld [vmem:[%s3932_s26 + $0x180] sm:$0xff] }
  0x2d   : > { %3206 = vmatprep.subr.bf16.mxu0 %v3205_v13  ;;  %v414_v42 = vld [vmem:[%s3932_s26 + $0x70] sm:$0xff]  ;;  %v415_v44 = vld [vmem:[%s3932_s26 + $0x78] sm:$0xff]  ;;  %v449_v46 = vld [vmem:[%s3932_s26 + $0x188] sm:$0xff]  ;;  %v3215_v50 = vpack.c.bf16 %v311_v41, %v310_v40 }
  0x2e   : > { %3236 = vmatpush3.bf16.msra.mxu1 %v3235_v12  ;;  %v480_v48 = vld [vmem:[%s3932_s26 + $0x280] sm:$0xff]  ;;  %v481_v49 = vld [vmem:[%s3932_s26 + $0x288] sm:$0xff]  ;;  %v3247_v51 = vpack.c.bf16 %v415_v44, %v414_v42  ;;  %v3249_v52 = vpack.c.bf16 %v449_v46, %v448_v45  ;;  %v450_v6 = vld [vmem:[%s3932_s26 + $0x190] sm:$0xff]  ;;  %v4042_v12 = vcombine.high %v4020_v59, %v4020_v59 }
  0x2f   : > { %3238 = vmatprep.subr.bf16.mxu1 %v3237_v18  ;;  %v432_v53 = vld [vmem:[%s3932_s26 + $0x100] sm:$0xff]  ;;  %v433_v54 = vld [vmem:[%s3932_s26 + $0x108] sm:$0xff]  ;;  %v3281_v56 = vpack.c.bf16 %v481_v49, %v480_v48  ;;  %v451_v58 = vld [vmem:[%s3932_s26 + $0x198] sm:$0xff] }
  0x30   : > { %3208 = vmatpush3.bf16.msra.mxu0 %v3207_v24  ;;  %v464_v55 = vld [vmem:[%s3932_s26 + $0x200] sm:$0xff]  ;;  %v465_v57 = vld [vmem:[%s3932_s26 + $0x208] sm:$0xff]  ;;  %v482_v60 = vld [vmem:[%s3932_s26 + $0x290] sm:$0xff]  ;;  %v3251_v63 = vpack.c.bf16 %v433_v54, %v432_v53  ;;  %v3253_v2 = vpack.c.bf16 %v451_v58, %v450_v6 }
  0x31   : > { %3210 = vmatprep.subr.bf16.mxu0 %v3209_v27  ;;  %v483_v61 = vld [vmem:[%s3932_s26 + $0x298] sm:$0xff]  ;;  %v4027_v62 = vld [vmem:[%s4607_s0] sm:$0x3f]  ;;  %v3283_v7 = vpack.c.bf16 %v465_v57, %v464_v55  ;;  %v434_v3 = vld [vmem:[%s3932_s26 + $0x110] sm:$0xff] }
  0x32   : > { %3240 = vmatpush3.bf16.msra.mxu1 %v3239_v26  ;;  %v4032_v1 = vld.sshfl [vmem:[%s4608_s1 + $0x8] sm:$0x33 pattern:$0x76325410]  ;;  %v435_v4 = vld [vmem:[%s3932_s26 + $0x118] sm:$0xff]  ;;  %v466_v5 = vld [vmem:[%s3932_s26 + $0x210] sm:$0xff]  ;;  %v3285_v8 = vpack.c.bf16 %v483_v61, %v482_v60 }
  0x33   : > { %3242 = vmatprep.subr.bf16.mxu1 %v3241_v31  ;;  %v467_v9 = vld [vmem:[%s3932_s26 + $0x218] sm:$0xff]  ;;  %v452_v10 = vld [vmem:[%s3932_s26 + $0x1a0] sm:$0xff]  ;;  %v453_v11 = vld [vmem:[%s3932_s26 + $0x1a8] sm:$0xff]  ;;  %v4049_v16 = vcombine.high %v4032_v1, %v4032_v1  ;;  %v3255_v17 = vpack.c.bf16 %v435_v4, %v434_v3 }
  0x34   : > { %3212 = vmatpush3.bf16.msra.mxu0 %v3211_v37  ;;  %v484_v13 = vld [vmem:[%s3932_s26 + $0x2a0] sm:$0xff]  ;;  %v485_v14 = vld [vmem:[%s3932_s26 + $0x2a8] sm:$0xff]  ;;  %v3287_v18 = vpack.c.bf16 %v467_v9, %v466_v5  ;;  %v3257_v19 = vpack.c.bf16 %v453_v11, %v452_v10  ;;  %v454_v26 = vld [vmem:[%s3932_s26 + $0x1b0] sm:$0xff] }
  0x35   : > { %3214 = vmatprep.subr.bf16.mxu0 %v3213_v39  ;;  %v436_v20 = vld [vmem:[%s3932_s26 + $0x120] sm:$0xff]  ;;  %v437_v21 = vld [vmem:[%s3932_s26 + $0x128] sm:$0xff]  ;;  %v3289_v23 = vpack.c.bf16 %v485_v14, %v484_v13  ;;  %v455_v27 = vld [vmem:[%s3932_s26 + $0x1b8] sm:$0xff] }
  0x36   : > { %3244 = vmatpush3.bf16.msra.mxu1 %v3243_v38  ;;  %v468_v22 = vld [vmem:[%s3932_s26 + $0x220] sm:$0xff]  ;;  %v469_v24 = vld [vmem:[%s3932_s26 + $0x228] sm:$0xff]  ;;  %v486_v28 = vld [vmem:[%s3932_s26 + $0x2b0] sm:$0xff]  ;;  %v3259_v30 = vpack.c.bf16 %v437_v21, %v436_v20  ;;  %v3261_v32 = vpack.c.bf16 %v455_v27, %v454_v26 }
  0x37   : > { %3246 = vmatprep.subr.bf16.mxu1 %v3245_v43  ;;  %v487_v29 = vld [vmem:[%s3932_s26 + $0x2b8] sm:$0xff]  ;;  %v3291_v31 = vpack.c.bf16 %v469_v24, %v468_v22  ;;  %v438_v33 = vld [vmem:[%s3932_s26 + $0x130] sm:$0xff]  ;;  %v456_v38 = vld [vmem:[%s3932_s26 + $0x1c0] sm:$0xff] }
  0x38   : > { %3216 = vmatpush3.bf16.msra.mxu0 %v3215_v50  ;;  %v439_v34 = vld [vmem:[%s3932_s26 + $0x138] sm:$0xff]  ;;  %v470_v35 = vld [vmem:[%s3932_s26 + $0x230] sm:$0xff]  ;;  %v3293_v36 = vpack.c.bf16 %v487_v29, %v486_v28  ;;  %v457_v39 = vld [vmem:[%s3932_s26 + $0x1c8] sm:$0xff] }
  0x39   : > { %3250 = vmatprep.subr.bf16.mxu0 %v3249_v52  ;;  %v471_v37 = vld [vmem:[%s3932_s26 + $0x238] sm:$0xff]  ;;  %v488_v40 = vld [vmem:[%s3932_s26 + $0x2c0] sm:$0xff]  ;;  %v489_v41 = vld [vmem:[%s3932_s26 + $0x2c8] sm:$0xff]  ;;  %v3263_v42 = vpack.c.bf16 %v439_v34, %v438_v33  ;;  %v3265_v44 = vpack.c.bf16 %v457_v39, %v456_v38 }
  0x3a   : > { %3248 = vmatpush3.bf16.msra.mxu1 %v3247_v51  ;;  %v3295_v43 = vpack.c.bf16 %v471_v37, %v470_v35  ;;  %v440_v45 = vld [vmem:[%s3932_s26 + $0x140] sm:$0xff]  ;;  %v441_v46 = vld [vmem:[%s3932_s26 + $0x148] sm:$0xff]  ;;  %v3297_v48 = vpack.c.bf16 %v489_v41, %v488_v40  ;;  %v458_v50 = vld [vmem:[%s3932_s26 + $0x1d0] sm:$0xff] }
  0x3b   : > { %3282 = vmatprep.subr.bf16.mxu1 %v3281_v56  ;;  %393 = vmatmul.mubr.f32.vlgmr.msra.gmra.mrb[0].mxu0 %v4027_v62  ;;  %v472_v47 = vld [vmem:[%s3932_s26 + $0x240] sm:$0xff]  ;;  %v473_v49 = vld [vmem:[%s3932_s26 + $0x248] sm:$0xff]  ;;  %v459_v51 = vld [vmem:[%s3932_s26 + $0x1d8] sm:$0xff]  ;;  %v3267_v54 = vpack.c.bf16 %v441_v46, %v440_v45 }
  0x3c   : > { %3252 = vmatpush3.bf16.msra.mxu0 %v3251_v63  ;;  %663 = vmatprep.mubr.f32.mxu0 %v4042_v12  ;;  %v490_v52 = vld [vmem:[%s3932_s26 + $0x2d0] sm:$0xff]  ;;  %v491_v53 = vld [vmem:[%s3932_s26 + $0x2d8] sm:$0xff]  ;;  %v3299_v55 = vpack.c.bf16 %v473_v49, %v472_v47  ;;  %v3269_v56 = vpack.c.bf16 %v459_v51, %v458_v50  ;;  %v460_v63 = vld [vmem:[%s3932_s26 + $0x1e0] sm:$0xff] }
  0x3d   : > { %594 = vmatmul.mubr.f32.vlgmr.msra.gmra.mrb[0].mxu1 %v3942_v15  ;;  %3254 = vmatprep.subr.bf16.mxu0 %v3253_v2  ;;  %v442_v57 = vld [vmem:[%s3932_s26 + $0x150] sm:$0xff]  ;;  %v443_v6 = vld [vmem:[%s3932_s26 + $0x158] sm:$0xff]  ;;  %v3301_v60 = vpack.c.bf16 %v491_v53, %v490_v52  ;;  %v492_v2 = vld [vmem:[%s3932_s26 + $0x2e0] sm:$0xff] }
  0x3e   : > { %3284 = vmatpush3.bf16.msra.mxu1 %v3283_v7  ;;  %733 = vmatprep.mubr.f32.mxu1 %v4049_v16  ;;  %v474_v58 = vld [vmem:[%s3932_s26 + $0x250] sm:$0xff]  ;;  %v475_v61 = vld [vmem:[%s3932_s26 + $0x258] sm:$0xff]  ;;  %v461_v7 = vld [vmem:[%s3932_s26 + $0x1e8] sm:$0xff]  ;;  %v3271_v4 = vpack.c.bf16 %v443_v6, %v442_v57 }
  0x3f   : > { %3286 = vmatprep.subr.bf16.mxu1 %v3285_v8  ;;  %v493_v3 = vld [vmem:[%s3932_s26 + $0x2e8] sm:$0xff]  ;;  %v3303_v5 = vpack.c.bf16 %v475_v61, %v474_v58  ;;  %v3273_v8 = vpack.c.bf16 %v461_v7, %v460_v63  ;;  %v444_v9 = vld [vmem:[%s3932_s26 + $0x160] sm:$0xff]  ;;  %v495_v20 = vld [vmem:[%s3932_s26 + $0x2f8] sm:$0xff] }
  0x40   : > { %3256 = vmatpush3.bf16.msra.mxu0 %v3255_v17  ;;  %v445_v10 = vld [vmem:[%s3932_s26 + $0x168] sm:$0xff]  ;;  %v476_v11 = vld [vmem:[%s3932_s26 + $0x260] sm:$0xff]  ;;  %v3305_v13 = vpack.c.bf16 %v493_v3, %v492_v2  ;;  %v462_v17 = vld [vmem:[%s3932_s26 + $0x1f0] sm:$0xff] }
  0x41   : > { %3258 = vmatprep.subr.bf16.mxu0 %v3257_v19  ;;  %v477_v14 = vld [vmem:[%s3932_s26 + $0x268] sm:$0xff]  ;;  %v494_v19 = vld [vmem:[%s3932_s26 + $0x2f0] sm:$0xff]  ;;  %v3275_v21 = vpack.c.bf16 %v445_v10, %v444_v9  ;;  %v447_v26 = vld [vmem:[%s3932_s26 + $0x178] sm:$0xff] }
  0x42   : > { %3288 = vmatpush3.bf16.msra.mxu1 %v3287_v18  ;;  %v463_v18 = vld [vmem:[%s3932_s26 + $0x1f8] sm:$0xff]  ;;  %v3307_v22 = vpack.c.bf16 %v477_v14, %v476_v11  ;;  %v446_v24 = vld [vmem:[%s3932_s26 + $0x170] sm:$0xff]  ;;  %v3309_v28 = vpack.c.bf16 %v495_v20, %v494_v19  ;;  %v2276_v33 = vld [vmem:[%s3932_s26 + $0x388] sm:$0xff] }
  0x43   : > { %3290 = vmatprep.subr.bf16.mxu1 %v3289_v23  ;;  %v3277_v23 = vpack.c.bf16 %v463_v18, %v462_v17  ;;  %v478_v27 = vld [vmem:[%s3932_s26 + $0x270] sm:$0xff]  ;;  %v479_v29 = vld [vmem:[%s3932_s26 + $0x278] sm:$0xff]  ;;  %v3279_v34 = vpack.c.bf16 %v447_v26, %v446_v24  ;;  %v2227_v37 = vld [vmem:[%s3925_s18 + $0x100] sm:$0xff] }
  0x44   : > { %3260 = vmatpush3.bf16.msra.mxu0 %v3259_v30  ;;  %v2243_v30 = vld [vmem:[%s3925_s18 + $0x180] sm:$0xff]  ;;  %v3311_v35 = vpack.c.bf16 %v479_v29, %v478_v27  ;;  %v2228_v38 = vld [vmem:[%s3925_s18 + $0x108] sm:$0xff]  ;;  %v2278_v45 = vld [vmem:[%s3932_s26 + $0x398] sm:$0xff] }
  0x45   : > { %3262 = vmatprep.subr.bf16.mxu0 %v3261_v32  ;;  %v2275_v32 = vld [vmem:[%s3932_s26 + $0x380] sm:$0xff]  ;;  %v2260_v41 = vld [vmem:[%s3932_s26 + $0x308] sm:$0xff]  ;;  %v3315_v46 = vpack.c.bf16 %v2228_v38, %v2227_v37  ;;  %v2229_v49 = vld [vmem:[%s3925_s18 + $0x110] sm:$0xff] }
  0x46   : > { %3292 = vmatpush3.bf16.msra.mxu1 %v3291_v31  ;;  %v2244_v31 = vld [vmem:[%s3925_s18 + $0x188] sm:$0xff]  ;;  %v2259_v39 = vld [vmem:[%s3932_s26 + $0x300] sm:$0xff]  ;;  %v3345_v40 = vpack.c.bf16 %v2276_v33, %v2275_v32  ;;  %v2230_v50 = vld [vmem:[%s3925_s18 + $0x118] sm:$0xff] }
  0x47   : > { %3294 = vmatprep.subr.bf16.mxu1 %v3293_v36  ;;  %v3313_v36 = vpack.c.bf16 %v2244_v31, %v2243_v30  ;;  %v3347_v47 = vpack.c.bf16 %v2260_v41, %v2259_v39  ;;  %v2261_v51 = vld [vmem:[%s3932_s26 + $0x310] sm:$0xff]  ;;  %v2262_v53 = vld [vmem:[%s3932_s26 + $0x318] sm:$0xff]  ;;  %v2280_v57 = vld [vmem:[%s3932_s26 + $0x3a8] sm:$0xff]  ;;  %v3319_v6 = vpack.c.bf16 %v2230_v50, %v2229_v49 }
  0x48   : > { %3264 = vmatpush3.bf16.msra.mxu0 %v3263_v42  ;;  %v2245_v42 = vld [vmem:[%s3925_s18 + $0x190] sm:$0xff]  ;;  %v3351_v58 = vpack.c.bf16 %v2262_v53, %v2261_v51  ;;  %v2231_v61 = vld [vmem:[%s3925_s18 + $0x120] sm:$0xff]  ;;  %v2232_v63 = vld [vmem:[%s3925_s18 + $0x128] sm:$0xff] }
  0x49   : > { %3266 = vmatprep.subr.bf16.mxu0 %v3265_v44  ;;  %v2277_v44 = vld [vmem:[%s3932_s26 + $0x390] sm:$0xff]  ;;  %v2263_v7 = vld [vmem:[%s3932_s26 + $0x320] sm:$0xff]  ;;  %v2264_v3 = vld [vmem:[%s3932_s26 + $0x328] sm:$0xff]  ;;  %v3323_v10 = vpack.c.bf16 %v2232_v63, %v2231_v61 }
  0x4a   : > { %3296 = vmatpush3.bf16.msra.mxu1 %v3295_v43  ;;  %v2246_v43 = vld [vmem:[%s3925_s18 + $0x198] sm:$0xff]  ;;  %v3349_v52 = vpack.c.bf16 %v2278_v45, %v2277_v44  ;;  %v3355_v11 = vpack.c.bf16 %v2264_v3, %v2263_v7  ;;  %v2233_v14 = vld [vmem:[%s3925_s18 + $0x130] sm:$0xff]  ;;  %v2251_v20 = vld [vmem:[%s3925_s18 + $0x1c0] sm:$0xff] }
  0x4b   : > { %3298 = vmatprep.subr.bf16.mxu1 %v3297_v48  ;;  %v3317_v48 = vpack.c.bf16 %v2246_v43, %v2245_v42  ;;  %v2282_v9 = vld [vmem:[%s3932_s26 + $0x3b8] sm:$0xff]  ;;  %v2265_v18 = vld [vmem:[%s3932_s26 + $0x330] sm:$0xff]  ;;  %v2236_v29 = vld [vmem:[%s3925_s18 + $0x148] sm:$0xff] }
  0x4c   : > { %3268 = vmatpush3.bf16.msra.mxu0 %v3267_v54  ;;  %v2247_v54 = vld [vmem:[%s3925_s18 + $0x1a0] sm:$0xff]  ;;  %v2234_v17 = vld [vmem:[%s3925_s18 + $0x138] sm:$0xff]  ;;  %v2268_v32 = vld [vmem:[%s3932_s26 + $0x348] sm:$0xff] }
  0x4d   : > { %3270 = vmatprep.subr.bf16.mxu0 %v3269_v56  ;;  %v2279_v56 = vld [vmem:[%s3932_s26 + $0x3a0] sm:$0xff]  ;;  %v2266_v19 = vld [vmem:[%s3932_s26 + $0x338] sm:$0xff]  ;;  %v3327_v24 = vpack.c.bf16 %v2234_v17, %v2233_v14  ;;  %v2253_v33 = vld [vmem:[%s3925_s18 + $0x1d0] sm:$0xff] }
  0x4e   : > { %3300 = vmatpush3.bf16.msra.mxu1 %v3299_v55  ;;  %v2248_v55 = vld [vmem:[%s3925_s18 + $0x1a8] sm:$0xff]  ;;  %v3353_v2 = vpack.c.bf16 %v2280_v57, %v2279_v56  ;;  %v3359_v26 = vpack.c.bf16 %v2266_v19, %v2265_v18  ;;  %v2267_v30 = vld [vmem:[%s3932_s26 + $0x340] sm:$0xff]  ;;  %v2238_v41 = vld [vmem:[%s3925_s18 + $0x158] sm:$0xff] }
  0x4f   : > { %3302 = vmatprep.subr.bf16.mxu1 %v3301_v60  ;;  %v3321_v60 = vpack.c.bf16 %v2248_v55, %v2247_v54  ;;  %v3363_v38 = vpack.c.bf16 %v2268_v32, %v2267_v30  ;;  %v2269_v42 = vld [vmem:[%s3932_s26 + $0x350] sm:$0xff]  ;;  %v2270_v44 = vld [vmem:[%s3932_s26 + $0x358] sm:$0xff]  ;;  %v2255_v45 = vld [vmem:[%s3925_s18 + $0x1e0] sm:$0xff] }
  0x50   : > { %3272 = vmatpush3.bf16.msra.mxu0 %v3271_v4  ;;  %v2249_v4 = vld [vmem:[%s3925_s18 + $0x1b0] sm:$0xff]  ;;  %v3367_v50 = vpack.c.bf16 %v2270_v44, %v2269_v42  ;;  %v2240_v53 = vld [vmem:[%s3925_s18 + $0x168] sm:$0xff]  ;;  %v2271_v54 = vld [vmem:[%s3932_s26 + $0x360] sm:$0xff] }
  0x51   : > { %3274 = vmatprep.subr.bf16.mxu0 %v3273_v8  ;;  %v2281_v8 = vld [vmem:[%s3932_s26 + $0x3b0] sm:$0xff]  ;;  %v2272_v56 = vld [vmem:[%s3932_s26 + $0x368] sm:$0xff]  ;;  %v2242_v3 = vld [vmem:[%s3925_s18 + $0x178] sm:$0xff] }
  0x52   : > { %3304 = vmatpush3.bf16.msra.mxu1 %v3303_v5  ;;  %v2250_v5 = vld [vmem:[%s3925_s18 + $0x1b8] sm:$0xff]  ;;  %v2257_v57 = vld [vmem:[%s3925_s18 + $0x1f0] sm:$0xff]  ;;  %v3371_v63 = vpack.c.bf16 %v2272_v56, %v2271_v54  ;;  %v2292_v19 = vld [vmem:[%s3932_s26 + $0x408] sm:$0xff] }
  0x53   : > { %3306 = vmatprep.subr.bf16.mxu1 %v3305_v13  ;;  %v3325_v13 = vpack.c.bf16 %v2250_v5, %v2249_v4  ;;  %v2273_v4 = vld [vmem:[%s3932_s26 + $0x370] sm:$0xff]  ;;  %v2294_v32 = vld [vmem:[%s3932_s26 + $0x418] sm:$0xff]  ;;  %v2296_v44 = vld [vmem:[%s3932_s26 + $0x428] sm:$0xff] }
  0x54   : > { %3276 = vmatpush3.bf16.msra.mxu0 %v3275_v21  ;;  %v2252_v21 = vld [vmem:[%s3925_s18 + $0x1c8] sm:$0xff]  ;;  %v2297_v54 = vld [vmem:[%s3932_s26 + $0x430] sm:$0xff] }
  0x55   : > { %3278 = vmatprep.subr.bf16.mxu0 %v3277_v23  ;;  %v2284_v23 = vld [vmem:[%s3932_s26 + $0x3c8] sm:$0xff]  ;;  %v3329_v27 = vpack.c.bf16 %v2252_v21, %v2251_v20  ;;  %v2323_v20 = vld [vmem:[%s3932_s26 + $0x500] sm:$0xff]  ;;  %v2329_v56 = vld [vmem:[%s3932_s26 + $0x530] sm:$0xff] }
  0x56   : > { %3308 = vmatpush3.bf16.msra.mxu1 %v3307_v22  ;;  %v2283_v22 = vld [vmem:[%s3932_s26 + $0x3c0] sm:$0xff] }
  0x57   : > { %3310 = vmatprep.subr.bf16.mxu1 %v3309_v28  ;;  %v2235_v28 = vld [vmem:[%s3925_s18 + $0x140] sm:$0xff]  ;;  %v3361_v31 = vpack.c.bf16 %v2284_v23, %v2283_v22  ;;  %v2324_v22 = vld [vmem:[%s3932_s26 + $0x508] sm:$0xff]  ;;  %v2309_v23 = vld [vmem:[%s3932_s26 + $0x490] sm:$0xff] }
  0x58   : > { %3280 = vmatpush3.bf16.msra.mxu0 %v3279_v34  ;;  %v2254_v34 = vld [vmem:[%s3925_s18 + $0x1d8] sm:$0xff]  ;;  %v3331_v37 = vpack.c.bf16 %v2236_v29, %v2235_v28  ;;  %v3411_v29 = vpack.c.bf16 %v2324_v22, %v2323_v20  ;;  %v2301_v20 = vld [vmem:[%s3932_s26 + $0x450] sm:$0xff] }
  0x59   : > { %3314 = vmatprep.subr.bf16.mxu0 %v3313_v36  ;;  %v2286_v36 = vld [vmem:[%s3932_s26 + $0x3d8] sm:$0xff]  ;;  %v3333_v39 = vpack.c.bf16 %v2254_v34, %v2253_v33  ;;  %v2325_v33 = vld [vmem:[%s3932_s26 + $0x510] sm:$0xff] }
  0x5a   : > { %3312 = vmatpush3.bf16.msra.mxu1 %v3311_v35  ;;  %v2285_v35 = vld [vmem:[%s3932_s26 + $0x3d0] sm:$0xff] }
  0x5b   : > { %3346 = vmatprep.subr.bf16.mxu1 %v3345_v40  ;;  %664 = vmatmul.mubr.f32.vlgmr.msra.gmra.mrb[2].mxu0 %v4020_v59  ;;  %v2237_v40 = vld [vmem:[%s3925_s18 + $0x150] sm:$0xff]  ;;  %v3365_v43 = vpack.c.bf16 %v2286_v36, %v2285_v35  ;;  %v2326_v35 = vld [vmem:[%s3932_s26 + $0x518] sm:$0xff]  ;;  %v2311_v36 = vld [vmem:[%s3932_s26 + $0x4a0] sm:$0xff] }
  0x5c   : > { %3316 = vmatpush3.bf16.msra.mxu0 %v3315_v46  ;;  %838 = vmatprep.mubr.f32.mxu0 %v3914_v0  ;;  %v3357_v0 = vpack.c.bf16 %v2282_v9, %v2281_v8  ;;  %v2256_v46 = vld [vmem:[%s3925_s18 + $0x1e8] sm:$0xff]  ;;  %v3335_v49 = vpack.c.bf16 %v2238_v41, %v2237_v40  ;;  %v2274_v8 = vld [vmem:[%s3932_s26 + $0x378] sm:$0xff]  ;;  %v2307_v9 = vld [vmem:[%s3932_s26 + $0x480] sm:$0xff]  ;;  %v3415_v41 = vpack.c.bf16 %v2326_v35, %v2325_v33 }
  0x5d   : > { %734 = vmatmul.mubr.f32.vlgmr.msra.gmra.mrb[2].mxu1 %v4032_v1  ;;  %3318 = vmatprep.subr.bf16.mxu0 %v3317_v48  ;;  %v2288_v48 = vld [vmem:[%s3932_s26 + $0x3e8] sm:$0xff]  ;;  %v3337_v51 = vpack.c.bf16 %v2256_v46, %v2255_v45  ;;  %v3375_v17 = vpack.c.bf16 %v2274_v8, %v2273_v4  ;;  %v2327_v45 = vld [vmem:[%s3932_s26 + $0x520] sm:$0xff]  ;;  %v2333_v22 = vld [vmem:[%s3932_s26 + $0x550] sm:$0xff] }
  0x5e   : > { %3348 = vmatpush3.bf16.msra.mxu1 %v3347_v47  ;;  %1006 = vmatprep.mubr.f32.mxu1 %v3952_v25  ;;  %v2287_v47 = vld [vmem:[%s3932_s26 + $0x3e0] sm:$0xff]  ;;  %v2328_v46 = vld [vmem:[%s3932_s26 + $0x528] sm:$0xff] }
  0x5f   : > { %3350 = vmatprep.subr.bf16.mxu1 %v3349_v52  ;;  %v2239_v52 = vld [vmem:[%s3925_s18 + $0x160] sm:$0xff]  ;;  %v3369_v55 = vpack.c.bf16 %v2288_v48, %v2287_v47  ;;  %v2313_v47 = vld [vmem:[%s3932_s26 + $0x4b0] sm:$0xff]  ;;  %v2314_v48 = vld [vmem:[%s3932_s26 + $0x4b8] sm:$0xff] }
  0x60   : > { %3320 = vmatpush3.bf16.msra.mxu0 %v3319_v6  ;;  %v2258_v6 = vld [vmem:[%s3925_s18 + $0x1f8] sm:$0xff]  ;;  %v3339_v61 = vpack.c.bf16 %v2240_v53, %v2239_v52  ;;  %v3419_v52 = vpack.c.bf16 %v2328_v46, %v2327_v45  ;;  %v3389_v53 = vpack.c.bf16 %v2314_v48, %v2313_v47  ;;  %v2299_v4 = vld [vmem:[%s3932_s26 + $0x440] sm:$0xff]  ;;  %v2305_v45 = vld [vmem:[%s3932_s26 + $0x470] sm:$0xff] }
  0x61   : > { %3322 = vmatprep.subr.bf16.mxu0 %v3321_v60  ;;  %v2290_v60 = vld [vmem:[%s3932_s26 + $0x3f8] sm:$0xff]  ;;  %v3341_v7 = vpack.c.bf16 %v2258_v6, %v2257_v57  ;;  %v2331_v8 = vld [vmem:[%s3932_s26 + $0x540] sm:$0xff]  ;;  %v2337_v46 = vld [vmem:[%s3932_s26 + $0x570] sm:$0xff] }
  0x62   : > { %3352 = vmatpush3.bf16.msra.mxu1 %v3351_v58  ;;  %v2289_v58 = vld [vmem:[%s3932_s26 + $0x3f0] sm:$0xff]  ;;  %v2330_v6 = vld [vmem:[%s3932_s26 + $0x538] sm:$0xff]  ;;  %v2303_v33 = vld [vmem:[%s3932_s26 + $0x460] sm:$0xff] }
  0x63   : > { %3354 = vmatprep.subr.bf16.mxu1 %v3353_v2  ;;  %v2241_v2 = vld [vmem:[%s3925_s18 + $0x170] sm:$0xff]  ;;  %v3373_v5 = vpack.c.bf16 %v2290_v60, %v2289_v58  ;;  %v2315_v58 = vld [vmem:[%s3932_s26 + $0x4c0] sm:$0xff]  ;;  %v2316_v60 = vld [vmem:[%s3932_s26 + $0x4c8] sm:$0xff] }
  0x64   : > { %3324 = vmatpush3.bf16.msra.mxu0 %v3323_v10  ;;  %v2308_v10 = vld [vmem:[%s3932_s26 + $0x488] sm:$0xff]  ;;  %v3343_v14 = vpack.c.bf16 %v2242_v3, %v2241_v2  ;;  %v3423_v2 = vpack.c.bf16 %v2330_v6, %v2329_v56  ;;  %v3393_v3 = vpack.c.bf16 %v2316_v60, %v2315_v58  ;;  %v2335_v35 = vld [vmem:[%s3932_s26 + $0x560] sm:$0xff]  ;;  %v2338_v48 = vld [vmem:[%s3932_s26 + $0x578] sm:$0xff] }
  0x65   : > { %3326 = vmatprep.subr.bf16.mxu0 %v3325_v13  ;;  %v2340_v13 = vld [vmem:[%s3932_s26 + $0x588] sm:$0xff]  ;;  %v3377_v18 = vpack.c.bf16 %v2308_v10, %v2307_v9  ;;  %v2355_v56 = vld [vmem:[%s3925_s18 + $0x200] sm:$0xff] }
  0x66   : > { %3356 = vmatpush3.bf16.msra.mxu1 %v3355_v11  ;;  %v2339_v11 = vld [vmem:[%s3932_s26 + $0x580] sm:$0xff]  ;;  %v2332_v10 = vld [vmem:[%s3932_s26 + $0x548] sm:$0xff] }
  0x67   : > { %3358 = vmatprep.subr.bf16.mxu1 %v3357_v0  ;;  %v2291_v0 = vld [vmem:[%s3932_s26 + $0x400] sm:$0xff]  ;;  %v3409_v21 = vpack.c.bf16 %v2340_v13, %v2339_v11  ;;  %v2317_v11 = vld [vmem:[%s3932_s26 + $0x4d0] sm:$0xff]  ;;  %v2318_v13 = vld [vmem:[%s3932_s26 + $0x4d8] sm:$0xff] }
  0x68   : > { %3328 = vmatpush3.bf16.msra.mxu0 %v3327_v24  ;;  %v2310_v24 = vld [vmem:[%s3932_s26 + $0x498] sm:$0xff]  ;;  %v3379_v28 = vpack.c.bf16 %v2292_v19, %v2291_v0  ;;  %v3427_v0 = vpack.c.bf16 %v2332_v10, %v2331_v8  ;;  %v3397_v19 = vpack.c.bf16 %v2318_v13, %v2317_v11  ;;  %v2387_v6 = vld [vmem:[%s3932_s26 + $0x600] sm:$0xff]  ;;  %v2388_v60 = vld [vmem:[%s3932_s26 + $0x608] sm:$0xff] }
  0x69   : > { %3330 = vmatprep.subr.bf16.mxu0 %v3329_v27  ;;  %v2342_v27 = vld [vmem:[%s3932_s26 + $0x598] sm:$0xff]  ;;  %v3381_v30 = vpack.c.bf16 %v2310_v24, %v2309_v23  ;;  %v2357_v8 = vld [vmem:[%s3925_s18 + $0x210] sm:$0xff] }
  0x6a   : > { %3360 = vmatpush3.bf16.msra.mxu1 %v3359_v26  ;;  %v2341_v26 = vld [vmem:[%s3932_s26 + $0x590] sm:$0xff]  ;;  %v2334_v24 = vld [vmem:[%s3932_s26 + $0x558] sm:$0xff] }
  0x6b   : > { %3362 = vmatprep.subr.bf16.mxu1 %v3361_v31  ;;  %v2293_v31 = vld [vmem:[%s3932_s26 + $0x410] sm:$0xff]  ;;  %v3413_v34 = vpack.c.bf16 %v2342_v27, %v2341_v26  ;;  %v2319_v26 = vld [vmem:[%s3932_s26 + $0x4e0] sm:$0xff]  ;;  %v2320_v27 = vld [vmem:[%s3932_s26 + $0x4e8] sm:$0xff] }
  0x6c   : > { %3332 = vmatpush3.bf16.msra.mxu0 %v3331_v37  ;;  %v2312_v37 = vld [vmem:[%s3932_s26 + $0x4a8] sm:$0xff]  ;;  %v3383_v40 = vpack.c.bf16 %v2294_v32, %v2293_v31  ;;  %v3431_v31 = vpack.c.bf16 %v2334_v24, %v2333_v22  ;;  %v3401_v32 = vpack.c.bf16 %v2320_v27, %v2319_v26  ;;  %v2389_v10 = vld [vmem:[%s3932_s26 + $0x610] sm:$0xff]  ;;  %v2390_v13 = vld [vmem:[%s3932_s26 + $0x618] sm:$0xff] }
  0x6d   : > { %3334 = vmatprep.subr.bf16.mxu0 %v3333_v39  ;;  %v2344_v39 = vld [vmem:[%s3932_s26 + $0x5a8] sm:$0xff]  ;;  %v3385_v42 = vpack.c.bf16 %v2312_v37, %v2311_v36  ;;  %v2359_v22 = vld [vmem:[%s3925_s18 + $0x220] sm:$0xff] }
  0x6e   : > { %3364 = vmatpush3.bf16.msra.mxu1 %v3363_v38  ;;  %v2343_v38 = vld [vmem:[%s3932_s26 + $0x5a0] sm:$0xff]  ;;  %v2336_v37 = vld [vmem:[%s3932_s26 + $0x568] sm:$0xff] }
  0x6f   : > { %3366 = vmatprep.subr.bf16.mxu1 %v3365_v43  ;;  %v2295_v43 = vld [vmem:[%s3932_s26 + $0x420] sm:$0xff]  ;;  %v2392_v27 = vld [vmem:[%s3932_s26 + $0x628] sm:$0xff] }
  0x70   : > { %3336 = vmatpush3.bf16.msra.mxu0 %v3335_v49  ;;  %v2345_v49 = vld [vmem:[%s3932_s26 + $0x5b0] sm:$0xff]  ;;  %v2391_v24 = vld [vmem:[%s3932_s26 + $0x620] sm:$0xff] }
  0x71   : > { %3338 = vmatprep.subr.bf16.mxu0 %v3337_v51  ;;  %v3387_v51 = vpack.c.bf16 %v2296_v44, %v2295_v43  ;;  %v3435_v43 = vpack.c.bf16 %v2336_v37, %v2335_v35  ;;  %v2361_v35 = vld [vmem:[%s3925_s18 + $0x230] sm:$0xff] }
  0x72   : > { %3368 = vmatpush3.bf16.msra.mxu1 %v3367_v50  ;;  %v2346_v50 = vld [vmem:[%s3932_s26 + $0x5b8] sm:$0xff]  ;;  %v2393_v37 = vld [vmem:[%s3932_s26 + $0x630] sm:$0xff] }
  0x73   : > { %3370 = vmatprep.subr.bf16.mxu1 %v3369_v55  ;;  %v2298_v55 = vld [vmem:[%s3932_s26 + $0x438] sm:$0xff]  ;;  %v3421_v57 = vpack.c.bf16 %v2346_v50, %v2345_v49  ;;  %v2371_v49 = vld [vmem:[%s3925_s18 + $0x280] sm:$0xff]  ;;  %v2372_v50 = vld [vmem:[%s3925_s18 + $0x288] sm:$0xff] }
  0x74   : > { %3340 = vmatpush3.bf16.msra.mxu0 %v3339_v61  ;;  %v2347_v61 = vld [vmem:[%s3932_s26 + $0x5c0] sm:$0xff] }
  0x75   : > { %3342 = vmatprep.subr.bf16.mxu0 %v3341_v7  ;;  %v3391_v7 = vpack.c.bf16 %v2298_v55, %v2297_v54  ;;  %v3439_v54 = vpack.c.bf16 %v2338_v48, %v2337_v46  ;;  %v3441_v55 = vpack.c.bf16 %v2372_v50, %v2371_v49  ;;  %v2363_v46 = vld [vmem:[%s3925_s18 + $0x240] sm:$0xff]  ;;  %v2396_v50 = vld [vmem:[%s3932_s26 + $0x648] sm:$0xff] }
  0x76   : > { %3372 = vmatpush3.bf16.msra.mxu1 %v3371_v63  ;;  %v2348_v63 = vld [vmem:[%s3932_s26 + $0x5c8] sm:$0xff]  ;;  %v2395_v48 = vld [vmem:[%s3932_s26 + $0x640] sm:$0xff] }
  0x77   : > { %3374 = vmatprep.subr.bf16.mxu1 %v3373_v5  ;;  %v2300_v5 = vld [vmem:[%s3932_s26 + $0x448] sm:$0xff]  ;;  %v3425_v9 = vpack.c.bf16 %v2348_v63, %v2347_v61  ;;  %v2373_v61 = vld [vmem:[%s3925_s18 + $0x290] sm:$0xff]  ;;  %v2374_v63 = vld [vmem:[%s3925_s18 + $0x298] sm:$0xff] }
  0x78   : > { %3344 = vmatpush3.bf16.msra.mxu0 %v3343_v14  ;;  %v2349_v14 = vld [vmem:[%s3932_s26 + $0x5d0] sm:$0xff] }
  0x79   : > { %3378 = vmatprep.subr.bf16.mxu0 %v3377_v18  ;;  %v3395_v18 = vpack.c.bf16 %v2300_v5, %v2299_v4  ;;  %v3475_v4 = vpack.c.bf16 %v2388_v60, %v2387_v6  ;;  %v3445_v5 = vpack.c.bf16 %v2374_v63, %v2373_v61  ;;  %v2365_v6 = vld [vmem:[%s3925_s18 + $0x250] sm:$0xff]  ;;  %v2398_v63 = vld [vmem:[%s3932_s26 + $0x658] sm:$0xff] }
  0x7a   : > { %3376 = vmatpush3.bf16.msra.mxu1 %v3375_v17  ;;  %v2350_v17 = vld [vmem:[%s3932_s26 + $0x5d8] sm:$0xff]  ;;  %v2397_v60 = vld [vmem:[%s3932_s26 + $0x650] sm:$0xff] }
  0x7b   : > { %3410 = vmatprep.subr.bf16.mxu1 %v3409_v21  ;;  %839 = vmatmul.mubr.f32.vlgmr.msra.gmra.mrb[4].mxu0 %v4027_v62  ;;  %v3417_v62 = vpack.c.bf16 %v2344_v39, %v2343_v38  ;;  %v2302_v21 = vld [vmem:[%s3932_s26 + $0x458] sm:$0xff]  ;;  %v3429_v23 = vpack.c.bf16 %v2350_v17, %v2349_v14  ;;  %v2321_v38 = vld [vmem:[%s3932_s26 + $0x4f0] sm:$0xff]  ;;  %v2375_v14 = vld [vmem:[%s3925_s18 + $0x2a0] sm:$0xff] }
  0x7c   : > { %3380 = vmatpush3.bf16.msra.mxu0 %v3379_v28  ;;  %1076 = vmatprep.mubr.f32.mxu0 %v4042_v12  ;;  %v2351_v28 = vld [vmem:[%s3932_s26 + $0x5e0] sm:$0xff]  ;;  %v2322_v39 = vld [vmem:[%s3932_s26 + $0x4f8] sm:$0xff]  ;;  %v2376_v17 = vld [vmem:[%s3925_s18 + $0x2a8] sm:$0xff] }
  0x7d   : > { %1007 = vmatmul.mubr.f32.vlgmr.msra.gmra.mrb[4].mxu1 %v3942_v15  ;;  %3382 = vmatprep.subr.bf16.mxu0 %v3381_v30  ;;  %v3399_v30 = vpack.c.bf16 %v2302_v21, %v2301_v20  ;;  %v3405_v44 = vpack.c.bf16 %v2322_v39, %v2321_v38  ;;  %v3479_v20 = vpack.c.bf16 %v2390_v13, %v2389_v10  ;;  %v2394_v39 = vld [vmem:[%s3932_s26 + $0x638] sm:$0xff]  ;;  %v2367_v10 = vld [vmem:[%s3925_s18 + $0x260] sm:$0xff] }
  0x7e   : > { %3412 = vmatpush3.bf16.msra.mxu1 %v3411_v29  ;;  %1146 = vmatprep.mubr.f32.mxu1 %v4049_v16  ;;  %v2352_v29 = vld [vmem:[%s3932_s26 + $0x5e8] sm:$0xff]  ;;  %v3449_v21 = vpack.c.bf16 %v2376_v17, %v2375_v14  ;;  %v2399_v13 = vld [vmem:[%s3932_s26 + $0x660] sm:$0xff] }
  0x7f   : > { %3414 = vmatprep.subr.bf16.mxu1 %v3413_v34  ;;  %v2304_v34 = vld [vmem:[%s3932_s26 + $0x468] sm:$0xff]  ;;  %v3433_v36 = vpack.c.bf16 %v2352_v29, %v2351_v28  ;;  %v2377_v28 = vld [vmem:[%s3925_s18 + $0x2b0] sm:$0xff]  ;;  %v2378_v29 = vld [vmem:[%s3925_s18 + $0x2b8] sm:$0xff] }
  0x80   : > { %3384 = vmatpush3.bf16.msra.mxu0 %v3383_v40  ;;  %v2353_v40 = vld [vmem:[%s3932_s26 + $0x5f0] sm:$0xff]  ;;  %v2400_v17 = vld [vmem:[%s3932_s26 + $0x668] sm:$0xff] }
  0x81   : > { %3386 = vmatprep.subr.bf16.mxu0 %v3385_v42  ;;  %v3403_v42 = vpack.c.bf16 %v2304_v34, %v2303_v33  ;;  %v3483_v33 = vpack.c.bf16 %v2392_v27, %v2391_v24  ;;  %v3453_v34 = vpack.c.bf16 %v2378_v29, %v2377_v28  ;;  %v2369_v24 = vld [vmem:[%s3925_s18 + $0x270] sm:$0xff]  ;;  %v2402_v29 = vld [vmem:[%s3932_s26 + $0x678] sm:$0xff] }
  0x82   : > { %3416 = vmatpush3.bf16.msra.mxu1 %v3415_v41  ;;  %v2354_v41 = vld [vmem:[%s3932_s26 + $0x5f8] sm:$0xff]  ;;  %v2401_v27 = vld [vmem:[%s3932_s26 + $0x670] sm:$0xff] }
  0x83   : > { %3418 = vmatprep.subr.bf16.mxu1 %v3417_v62  ;;  %v2306_v62 = vld [vmem:[%s3932_s26 + $0x478] sm:$0xff]  ;;  %v3437_v47 = vpack.c.bf16 %v2354_v41, %v2353_v40  ;;  %v2379_v40 = vld [vmem:[%s3925_s18 + $0x2c0] sm:$0xff]  ;;  %v2380_v41 = vld [vmem:[%s3925_s18 + $0x2c8] sm:$0xff] }
  0x84   : > { %3388 = vmatpush3.bf16.msra.mxu0 %v3387_v51  ;;  %v2403_v51 = vld [vmem:[%s3932_s26 + $0x680] sm:$0xff] }
  0x85   : > { %3390 = vmatprep.subr.bf16.mxu0 %v3389_v53  ;;  %v3407_v53 = vpack.c.bf16 %v2306_v62, %v2305_v45  ;;  %v3487_v45 = vpack.c.bf16 %v2394_v39, %v2393_v37  ;;  %v3457_v62 = vpack.c.bf16 %v2380_v41, %v2379_v40  ;;  %v2419_v37 = vld [vmem:[%s3932_s26 + $0x700] sm:$0xff]  ;;  %v2452_v41 = vld [vmem:[%s3932_s26 + $0x808] sm:$0xff] }
  0x86   : > { %3420 = vmatpush3.bf16.msra.mxu1 %v3419_v52  ;;  %v2404_v52 = vld [vmem:[%s3932_s26 + $0x688] sm:$0xff]  ;;  %v2451_v39 = vld [vmem:[%s3932_s26 + $0x800] sm:$0xff] }
  0x87   : > { %3422 = vmatprep.subr.bf16.mxu1 %v3421_v57  ;;  %v2356_v57 = vld [vmem:[%s3925_s18 + $0x208] sm:$0xff]  ;;  %v3473_v58 = vpack.c.bf16 %v2404_v52, %v2403_v51  ;;  %v2381_v51 = vld [vmem:[%s3925_s18 + $0x2d0] sm:$0xff]  ;;  %v2382_v52 = vld [vmem:[%s3925_s18 + $0x2d8] sm:$0xff] }
  0x88   : > { %3392 = vmatpush3.bf16.msra.mxu0 %v3391_v7  ;;  %v2405_v7 = vld [vmem:[%s3932_s26 + $0x690] sm:$0xff] }
  0x89   : > { %3394 = vmatprep.subr.bf16.mxu0 %v3393_v3  ;;  %v3443_v3 = vpack.c.bf16 %v2356_v57, %v2355_v56  ;;  %v3491_v56 = vpack.c.bf16 %v2396_v50, %v2395_v48  ;;  %v3461_v57 = vpack.c.bf16 %v2382_v52, %v2381_v51  ;;  %v2421_v48 = vld [vmem:[%s3932_s26 + $0x710] sm:$0xff]  ;;  %v2454_v52 = vld [vmem:[%s3932_s26 + $0x818] sm:$0xff] }
  0x8a   : > { %3424 = vmatpush3.bf16.msra.mxu1 %v3423_v2  ;;  %v2406_v2 = vld [vmem:[%s3932_s26 + $0x698] sm:$0xff]  ;;  %v2453_v50 = vld [vmem:[%s3932_s26 + $0x810] sm:$0xff] }
  0x8b   : > { %3426 = vmatprep.subr.bf16.mxu1 %v3425_v9  ;;  %v2358_v9 = vld [vmem:[%s3925_s18 + $0x218] sm:$0xff]  ;;  %v3477_v11 = vpack.c.bf16 %v2406_v2, %v2405_v7  ;;  %v2383_v7 = vld [vmem:[%s3925_s18 + $0x2e0] sm:$0xff]  ;;  %v2384_v2 = vld [vmem:[%s3925_s18 + $0x2e8] sm:$0xff] }
  0x8c   : > { %3396 = vmatpush3.bf16.msra.mxu0 %v3395_v18  ;;  %v2407_v18 = vld [vmem:[%s3932_s26 + $0x6a0] sm:$0xff] }
  0x8d   : > { %3398 = vmatprep.subr.bf16.mxu0 %v3397_v19  ;;  %v3447_v19 = vpack.c.bf16 %v2358_v9, %v2357_v8  ;;  %v3495_v8 = vpack.c.bf16 %v2398_v63, %v2397_v60  ;;  %v3465_v9 = vpack.c.bf16 %v2384_v2, %v2383_v7  ;;  %v2424_v63 = vld [vmem:[%s3932_s26 + $0x728] sm:$0xff]  ;;  %v2455_v7 = vld [vmem:[%s3932_s26 + $0x820] sm:$0xff] }
  0x8e   : > { %3428 = vmatpush3.bf16.msra.mxu1 %v3427_v0  ;;  %v2408_v0 = vld [vmem:[%s3932_s26 + $0x6a8] sm:$0xff] }
  0x8f   : > { %3430 = vmatprep.subr.bf16.mxu1 %v3429_v23  ;;  %v2360_v23 = vld [vmem:[%s3925_s18 + $0x228] sm:$0xff]  ;;  %v3481_v26 = vpack.c.bf16 %v2408_v0, %v2407_v18  ;;  %v2385_v18 = vld [vmem:[%s3925_s18 + $0x2f0] sm:$0xff]  ;;  %v2386_v0 = vld [vmem:[%s3925_s18 + $0x2f8] sm:$0xff] }
  0x90   : > { %3400 = vmatpush3.bf16.msra.mxu0 %v3399_v30  ;;  %v2409_v30 = vld [vmem:[%s3932_s26 + $0x6b0] sm:$0xff] }
  0x91   : > { %3402 = vmatprep.subr.bf16.mxu0 %v3401_v32  ;;  %v3451_v32 = vpack.c.bf16 %v2360_v23, %v2359_v22  ;;  %v3499_v22 = vpack.c.bf16 %v2400_v17, %v2399_v13  ;;  %v3469_v23 = vpack.c.bf16 %v2386_v0, %v2385_v18  ;;  %v2426_v17 = vld [vmem:[%s3932_s26 + $0x738] sm:$0xff]  ;;  %v2457_v18 = vld [vmem:[%s3932_s26 + $0x830] sm:$0xff] }
  0x92   : > { %3432 = vmatpush3.bf16.msra.mxu1 %v3431_v31  ;;  %v2410_v31 = vld [vmem:[%s3932_s26 + $0x6b8] sm:$0xff] }
  0x93   : > { %3434 = vmatprep.subr.bf16.mxu1 %v3433_v36  ;;  %v2362_v36 = vld [vmem:[%s3925_s18 + $0x238] sm:$0xff]  ;;  %v3485_v38 = vpack.c.bf16 %v2410_v31, %v2409_v30  ;;  %v2435_v30 = vld [vmem:[%s3932_s26 + $0x780] sm:$0xff]  ;;  %v2436_v31 = vld [vmem:[%s3932_s26 + $0x788] sm:$0xff] }
  0x94   : > { %3404 = vmatpush3.bf16.msra.mxu0 %v3403_v42  ;;  %v2411_v42 = vld [vmem:[%s3932_s26 + $0x6c0] sm:$0xff] }
  0x95   : > { %3406 = vmatprep.subr.bf16.mxu0 %v3405_v44  ;;  %v3455_v44 = vpack.c.bf16 %v2362_v36, %v2361_v35  ;;  %v3503_v35 = vpack.c.bf16 %v2402_v29, %v2401_v27  ;;  %v3505_v36 = vpack.c.bf16 %v2436_v31, %v2435_v30  ;;  %v2428_v29 = vld [vmem:[%s3932_s26 + $0x748] sm:$0xff]  ;;  %v2459_v30 = vld [vmem:[%s3932_s26 + $0x840] sm:$0xff] }
  0x96   : > { %3436 = vmatpush3.bf16.msra.mxu1 %v3435_v43  ;;  %v2412_v43 = vld [vmem:[%s3932_s26 + $0x6c8] sm:$0xff] }
  0x97   : > { %3438 = vmatprep.subr.bf16.mxu1 %v3437_v47  ;;  %v2364_v47 = vld [vmem:[%s3925_s18 + $0x248] sm:$0xff]  ;;  %v3489_v49 = vpack.c.bf16 %v2412_v43, %v2411_v42  ;;  %v2437_v42 = vld [vmem:[%s3932_s26 + $0x790] sm:$0xff]  ;;  %v2438_v43 = vld [vmem:[%s3932_s26 + $0x798] sm:$0xff] }
  0x98   : > { %3408 = vmatpush3.bf16.msra.mxu0 %v3407_v53  ;;  %v2413_v53 = vld [vmem:[%s3932_s26 + $0x6d0] sm:$0xff] }
  0x99   : > { %3442 = vmatprep.subr.bf16.mxu0 %v3441_v55  ;;  %v3459_v55 = vpack.c.bf16 %v2364_v47, %v2363_v46  ;;  %v3539_v46 = vpack.c.bf16 %v2452_v41, %v2451_v39  ;;  %v3509_v47 = vpack.c.bf16 %v2438_v43, %v2437_v42  ;;  %v2430_v41 = vld [vmem:[%s3932_s26 + $0x758] sm:$0xff]  ;;  %v2461_v42 = vld [vmem:[%s3932_s26 + $0x850] sm:$0xff] }
  0x9a   : > { %3440 = vmatpush3.bf16.msra.mxu1 %v3439_v54  ;;  %v2414_v54 = vld [vmem:[%s3932_s26 + $0x6d8] sm:$0xff] }
  0x9b   : > { %3474 = vmatprep.subr.bf16.mxu1 %v3473_v58  ;;  %1077 = vmatmul.mubr.f32.vlgmr.msra.gmra.mrb[6].mxu0 %v4020_v59  ;;  %v2366_v58 = vld [vmem:[%s3925_s18 + $0x258] sm:$0xff]  ;;  %v3493_v61 = vpack.c.bf16 %v2414_v54, %v2413_v53  ;;  %v2439_v53 = vld [vmem:[%s3932_s26 + $0x7a0] sm:$0xff]  ;;  %v2440_v54 = vld [vmem:[%s3932_s26 + $0x7a8] sm:$0xff] }
  0x9c   : > { %3444 = vmatpush3.bf16.msra.mxu0 %v3443_v3  ;;  %v2415_v3 = vld [vmem:[%s3932_s26 + $0x6e0] sm:$0xff]  ;;  %v3513_v60 = vpack.c.bf16 %v2440_v54, %v2439_v53 }
  0x9d   : > { %1147 = vmatmul.mubr.f32.vlgmr.msra.gmra.mrb[6].mxu1 %v4032_v1  ;;  %3446 = vmatprep.subr.bf16.mxu0 %v3445_v5  ;;  %v4265_v1 = vld [vmem:[%s4607_s0 + $0x8] sm:$0x3f]  ;;  %v3463_v5 = vpack.c.bf16 %v2366_v58, %v2365_v6  ;;  %v3543_v58 = vpack.c.bf16 %v2454_v52, %v2453_v50  ;;  %v2463_v53 = vld [vmem:[%s3932_s26 + $0x860] sm:$0xff] }
  0x9e   : > { %3476 = vmatpush3.bf16.msra.mxu1 %v3475_v4  ;;  %1250 = vmatprep.mubr.f32.mxu0 %v4265_v1  ;;  %v2416_v4 = vld [vmem:[%s3932_s26 + $0x6e8] sm:$0xff] }
  0x9f   : > { %3478 = vmatprep.subr.bf16.mxu1 %v3477_v11  ;;  %1418 = vmatprep.mubr.f32.mxu1 %v3952_v25  ;;  %v2368_v11 = vld [vmem:[%s3925_s18 + $0x268] sm:$0xff]  ;;  %v3497_v14 = vpack.c.bf16 %v2416_v4, %v2415_v3  ;;  %v2441_v4 = vld [vmem:[%s3932_s26 + $0x7b0] sm:$0xff] }
  0xa0   : > { %3448 = vmatpush3.bf16.msra.mxu0 %v3447_v19  ;;  %v2417_v19 = vld [vmem:[%s3932_s26 + $0x6f0] sm:$0xff]  ;;  %v2456_v3 = vld [vmem:[%s3932_s26 + $0x828] sm:$0xff] }
  0xa1   : > { %3450 = vmatprep.subr.bf16.mxu0 %v3449_v21  ;;  %v3467_v21 = vpack.c.bf16 %v2368_v11, %v2367_v10  ;;  %v3547_v11 = vpack.c.bf16 %v2456_v3, %v2455_v7  ;;  %v2432_v52 = vld [vmem:[%s3932_s26 + $0x768] sm:$0xff]  ;;  %v2434_v3 = vld [vmem:[%s3932_s26 + $0x778] sm:$0xff] }
  0xa2   : > { %3480 = vmatpush3.bf16.msra.mxu1 %v3479_v20  ;;  %v2418_v20 = vld [vmem:[%s3932_s26 + $0x6f8] sm:$0xff] }
  0xa3   : > { %3482 = vmatprep.subr.bf16.mxu1 %v3481_v26  ;;  %v2370_v26 = vld [vmem:[%s3925_s18 + $0x278] sm:$0xff]  ;;  %v3501_v28 = vpack.c.bf16 %v2418_v20, %v2417_v19  ;;  %v2443_v20 = vld [vmem:[%s3932_s26 + $0x7c0] sm:$0xff] }
  0xa4   : > { %3452 = vmatpush3.bf16.msra.mxu0 %v3451_v32  ;;  %v2467_v32 = vld [vmem:[%s3932_s26 + $0x880] sm:$0xff]  ;;  %v2458_v19 = vld [vmem:[%s3932_s26 + $0x838] sm:$0xff] }
  0xa5   : > { %3454 = vmatprep.subr.bf16.mxu0 %v3453_v34  ;;  %v3471_v34 = vpack.c.bf16 %v2370_v26, %v2369_v24  ;;  %v3551_v26 = vpack.c.bf16 %v2458_v19, %v2457_v18  ;;  %v2484_v19 = vld [vmem:[%s3925_s18 + $0x308] sm:$0xff] }
  0xa6   : > { %3484 = vmatpush3.bf16.msra.mxu1 %v3483_v33  ;;  %v2468_v33 = vld [vmem:[%s3932_s26 + $0x888] sm:$0xff] }
  0xa7   : > { %3486 = vmatprep.subr.bf16.mxu1 %v3485_v38  ;;  %v2420_v38 = vld [vmem:[%s3932_s26 + $0x708] sm:$0xff]  ;;  %v3537_v40 = vpack.c.bf16 %v2468_v33, %v2467_v32  ;;  %v2445_v33 = vld [vmem:[%s3932_s26 + $0x7d0] sm:$0xff] }
  0xa8   : > { %3456 = vmatpush3.bf16.msra.mxu0 %v3455_v44  ;;  %v2469_v44 = vld [vmem:[%s3932_s26 + $0x890] sm:$0xff]  ;;  %v2460_v32 = vld [vmem:[%s3932_s26 + $0x848] sm:$0xff] }
  0xa9   : > { %3458 = vmatprep.subr.bf16.mxu0 %v3457_v62  ;;  %v3507_v62 = vpack.c.bf16 %v2420_v38, %v2419_v37  ;;  %v3555_v38 = vpack.c.bf16 %v2460_v32, %v2459_v30  ;;  %v2486_v32 = vld [vmem:[%s3925_s18 + $0x318] sm:$0xff] }
  0xaa   : > { %3488 = vmatpush3.bf16.msra.mxu1 %v3487_v45  ;;  %v2470_v45 = vld [vmem:[%s3932_s26 + $0x898] sm:$0xff] }
  0xab   : > { %3490 = vmatprep.subr.bf16.mxu1 %v3489_v49  ;;  %v2422_v49 = vld [vmem:[%s3932_s26 + $0x718] sm:$0xff]  ;;  %v3541_v51 = vpack.c.bf16 %v2470_v45, %v2469_v44  ;;  %v2447_v45 = vld [vmem:[%s3932_s26 + $0x7e0] sm:$0xff] }
  0xac   : > { %3460 = vmatpush3.bf16.msra.mxu0 %v3459_v55  ;;  %v4328_v55 = vld [vmem:[%s4607_s0] sm:$0x3f]  ;;  %v3511_v6 = vpack.c.bf16 %v2422_v49, %v2421_v48  ;;  %v2462_v44 = vld [vmem:[%s3932_s26 + $0x858] sm:$0xff] }
  0xad   : > { %3462 = vmatprep.subr.bf16.mxu0 %v3461_v57  ;;  %v2472_v57 = vld [vmem:[%s3932_s26 + $0x8a8] sm:$0xff]  ;;  %v3559_v49 = vpack.c.bf16 %v2462_v44, %v2461_v42  ;;  %v2487_v44 = vld [vmem:[%s3925_s18 + $0x320] sm:$0xff] }
  0xae   : > { %3492 = vmatpush3.bf16.msra.mxu1 %v3491_v56  ;;  %v2471_v56 = vld [vmem:[%s3932_s26 + $0x8a0] sm:$0xff] }
  0xaf   : > { %3494 = vmatprep.subr.bf16.mxu1 %v3493_v61  ;;  %v2423_v61 = vld [vmem:[%s3932_s26 + $0x720] sm:$0xff]  ;;  %v3545_v2 = vpack.c.bf16 %v2472_v57, %v2471_v56  ;;  %v2464_v56 = vld [vmem:[%s3932_s26 + $0x868] sm:$0xff]  ;;  %v2449_v57 = vld [vmem:[%s3932_s26 + $0x7f0] sm:$0xff] }
  0xb0   : > { %3464 = vmatpush3.bf16.msra.mxu0 %v3463_v5  ;;  %v2442_v5 = vld [vmem:[%s3932_s26 + $0x7b8] sm:$0xff]  ;;  %v3515_v10 = vpack.c.bf16 %v2424_v63, %v2423_v61  ;;  %v3563_v63 = vpack.c.bf16 %v2464_v56, %v2463_v53  ;;  %v2489_v56 = vld [vmem:[%s3925_s18 + $0x330] sm:$0xff] }
  0xb1   : > { %3466 = vmatprep.subr.bf16.mxu0 %v3465_v9  ;;  %v2474_v9 = vld [vmem:[%s3932_s26 + $0x8b8] sm:$0xff]  ;;  %v3517_v13 = vpack.c.bf16 %v2442_v5, %v2441_v4  ;;  %v2465_v4 = vld [vmem:[%s3932_s26 + $0x870] sm:$0xff] }
  0xb2   : > { %3496 = vmatpush3.bf16.msra.mxu1 %v3495_v8  ;;  %v2473_v8 = vld [vmem:[%s3932_s26 + $0x8b0] sm:$0xff] }
  0xb3   : > { %3498 = vmatprep.subr.bf16.mxu1 %v3497_v14  ;;  %v2425_v14 = vld [vmem:[%s3932_s26 + $0x730] sm:$0xff]  ;;  %v3549_v0 = vpack.c.bf16 %v2474_v9, %v2473_v8  ;;  %v2466_v8 = vld [vmem:[%s3932_s26 + $0x878] sm:$0xff]  ;;  %v2499_v9 = vld [vmem:[%s3925_s18 + $0x380] sm:$0xff] }
  0xb4   : > { %3468 = vmatpush3.bf16.msra.mxu0 %v3467_v21  ;;  %v2444_v21 = vld [vmem:[%s3932_s26 + $0x7c8] sm:$0xff]  ;;  %v3519_v24 = vpack.c.bf16 %v2426_v17, %v2425_v14  ;;  %v3567_v17 = vpack.c.bf16 %v2466_v8, %v2465_v4  ;;  %v2491_v4 = vld [vmem:[%s3925_s18 + $0x340] sm:$0xff] }
  0xb5   : > { %3470 = vmatprep.subr.bf16.mxu0 %v3469_v23  ;;  %v2476_v23 = vld [vmem:[%s3932_s26 + $0x8c8] sm:$0xff]  ;;  %v3521_v27 = vpack.c.bf16 %v2444_v21, %v2443_v20  ;;  %v2515_v20 = vld [vmem:[%s3932_s26 + $0x900] sm:$0xff] }
  0xb6   : > { %3500 = vmatpush3.bf16.msra.mxu1 %v3499_v22  ;;  %v2475_v22 = vld [vmem:[%s3932_s26 + $0x8c0] sm:$0xff] }
  0xb7   : > { %3502 = vmatprep.subr.bf16.mxu1 %v3501_v28  ;;  %v2427_v28 = vld [vmem:[%s3932_s26 + $0x740] sm:$0xff]  ;;  %v3553_v31 = vpack.c.bf16 %v2476_v23, %v2475_v22  ;;  %v2516_v22 = vld [vmem:[%s3932_s26 + $0x908] sm:$0xff]  ;;  %v2501_v23 = vld [vmem:[%s3925_s18 + $0x390] sm:$0xff] }
  0xb8   : > { %3472 = vmatpush3.bf16.msra.mxu0 %v3471_v34  ;;  %v2446_v34 = vld [vmem:[%s3932_s26 + $0x7d8] sm:$0xff]  ;;  %v3523_v37 = vpack.c.bf16 %v2428_v29, %v2427_v28  ;;  %v3603_v29 = vpack.c.bf16 %v2516_v22, %v2515_v20  ;;  %v2523_v8 = vld [vmem:[%s3932_s26 + $0x940] sm:$0xff]  ;;  %v2493_v20 = vld [vmem:[%s3925_s18 + $0x350] sm:$0xff] }
  0xb9   : > { %3506 = vmatprep.subr.bf16.mxu0 %v3505_v36  ;;  %v2478_v36 = vld [vmem:[%s3932_s26 + $0x8d8] sm:$0xff]  ;;  %v3525_v39 = vpack.c.bf16 %v2446_v34, %v2445_v33  ;;  %v2517_v33 = vld [vmem:[%s3932_s26 + $0x910] sm:$0xff] }
  0xba   : > { %3504 = vmatpush3.bf16.msra.mxu1 %v3503_v35  ;;  %v2477_v35 = vld [vmem:[%s3932_s26 + $0x8d0] sm:$0xff] }
  0xbb   : > { %3538 = vmatprep.subr.bf16.mxu1 %v3537_v40  ;;  %1251 = vmatmul.mubr.f32.vlgmr.msra.gmra.mrb[8].mxu0 %v4328_v55  ;;  %v2429_v40 = vld [vmem:[%s3932_s26 + $0x750] sm:$0xff]  ;;  %v3557_v43 = vpack.c.bf16 %v2478_v36, %v2477_v35  ;;  %v2518_v35 = vld [vmem:[%s3932_s26 + $0x918] sm:$0xff]  ;;  %v2503_v36 = vld [vmem:[%s3925_s18 + $0x3a0] sm:$0xff] }
  0xbc   : > { %3508 = vmatpush3.bf16.msra.mxu0 %v3507_v62  ;;  %1488 = vmatprep.mubr.f32.mxu0 %v4042_v12  ;;  %v2448_v62 = vld [vmem:[%s3932_s26 + $0x7e8] sm:$0xff]  ;;  %v3527_v48 = vpack.c.bf16 %v2430_v41, %v2429_v40  ;;  %v3607_v42 = vpack.c.bf16 %v2518_v35, %v2517_v33  ;;  %v2525_v22 = vld [vmem:[%s3932_s26 + $0x950] sm:$0xff]  ;;  %v2495_v33 = vld [vmem:[%s3925_s18 + $0x360] sm:$0xff] }
  0xbd   : > { %1419 = vmatmul.mubr.f32.vlgmr.msra.gmra.mrb[8].mxu1 %v3942_v15  ;;  %3510 = vmatprep.subr.bf16.mxu0 %v3509_v47  ;;  %v2480_v47 = vld [vmem:[%s3932_s26 + $0x8e8] sm:$0xff]  ;;  %v3529_v50 = vpack.c.bf16 %v2448_v62, %v2447_v45  ;;  %v2519_v62 = vld [vmem:[%s3932_s26 + $0x920] sm:$0xff] }
  0xbe   : > { %3540 = vmatpush3.bf16.msra.mxu1 %v3539_v46  ;;  %1558 = vmatprep.mubr.f32.mxu1 %v4049_v16  ;;  %v2479_v46 = vld [vmem:[%s3932_s26 + $0x8e0] sm:$0xff]  ;;  %v4404_v40 = vld.sshfl [vmem:[%s4608_s1 + $0x8] sm:$0x33 pattern:$0x76325410] }
  0xbf   : > { %3542 = vmatprep.subr.bf16.mxu1 %v3541_v51  ;;  %v2431_v51 = vld [vmem:[%s3932_s26 + $0x760] sm:$0xff]  ;;  %v3561_v54 = vpack.c.bf16 %v2480_v47, %v2479_v46  ;;  %v2488_v45 = vld [vmem:[%s3925_s18 + $0x328] sm:$0xff] }
  0xc0   : > { %3512 = vmatpush3.bf16.msra.mxu0 %v3511_v6  ;;  %v2450_v6 = vld [vmem:[%s3932_s26 + $0x7f8] sm:$0xff]  ;;  %v3531_v61 = vpack.c.bf16 %v2432_v52, %v2431_v51  ;;  %v2520_v47 = vld [vmem:[%s3932_s26 + $0x928] sm:$0xff]  ;;  %v3579_v52 = vpack.c.bf16 %v2488_v45, %v2487_v44  ;;  %v2527_v35 = vld [vmem:[%s3932_s26 + $0x960] sm:$0xff] }
  0xc1   : > { %3514 = vmatprep.subr.bf16.mxu0 %v3513_v60  ;;  %v2482_v60 = vld [vmem:[%s3932_s26 + $0x8f8] sm:$0xff]  ;;  %v3533_v7 = vpack.c.bf16 %v2450_v6, %v2449_v57  ;;  %v3611_v53 = vpack.c.bf16 %v2520_v47, %v2519_v62  ;;  %v2521_v6 = vld [vmem:[%s3932_s26 + $0x930] sm:$0xff] }
  0xc2   : > { %3544 = vmatpush3.bf16.msra.mxu1 %v3543_v58  ;;  %v2481_v58 = vld [vmem:[%s3932_s26 + $0x8f0] sm:$0xff]  ;;  %v2538_v51 = vld [vmem:[%s3932_s26 + $0x9b8] sm:$0xff] }
  0xc3   : > { %3546 = vmatprep.subr.bf16.mxu1 %v3545_v2  ;;  %v2433_v2 = vld [vmem:[%s3932_s26 + $0x770] sm:$0xff]  ;;  %v3565_v5 = vpack.c.bf16 %v2482_v60, %v2481_v58  ;;  %v2490_v57 = vld [vmem:[%s3925_s18 + $0x338] sm:$0xff]  ;;  %v2507_v60 = vld [vmem:[%s3925_s18 + $0x3c0] sm:$0xff] }
  0xc4   : > { %3516 = vmatpush3.bf16.msra.mxu0 %v3515_v10  ;;  %v2500_v10 = vld [vmem:[%s3925_s18 + $0x388] sm:$0xff]  ;;  %v3535_v14 = vpack.c.bf16 %v2434_v3, %v2433_v2  ;;  %v2522_v58 = vld [vmem:[%s3932_s26 + $0x938] sm:$0xff]  ;;  %v2497_v62 = vld [vmem:[%s3925_s18 + $0x370] sm:$0xff] }
  0xc5   : > { %3518 = vmatprep.subr.bf16.mxu0 %v3517_v13  ;;  %v2532_v13 = vld [vmem:[%s3932_s26 + $0x988] sm:$0xff]  ;;  %v3569_v18 = vpack.c.bf16 %v2500_v10, %v2499_v9  ;;  %v3615_v2 = vpack.c.bf16 %v2522_v58, %v2521_v6  ;;  %v2529_v47 = vld [vmem:[%s3932_s26 + $0x970] sm:$0xff]  ;;  %v2547_v6 = vld [vmem:[%s3932_s26 + $0xa00] sm:$0xff] }
  0xc6   : > { %3548 = vmatpush3.bf16.msra.mxu1 %v3547_v11  ;;  %v2531_v11 = vld [vmem:[%s3932_s26 + $0x980] sm:$0xff]  ;;  %v2524_v10 = vld [vmem:[%s3932_s26 + $0x948] sm:$0xff] }
  0xc7   : > { %3550 = vmatprep.subr.bf16.mxu1 %v3549_v0  ;;  %v2483_v0 = vld [vmem:[%s3925_s18 + $0x300] sm:$0xff]  ;;  %v3601_v21 = vpack.c.bf16 %v2532_v13, %v2531_v11  ;;  %v2509_v11 = vld [vmem:[%s3925_s18 + $0x3d0] sm:$0xff]  ;;  %v2510_v13 = vld [vmem:[%s3925_s18 + $0x3d8] sm:$0xff] }
  0xc8   : > { %3520 = vmatpush3.bf16.msra.mxu0 %v3519_v24  ;;  %v2502_v24 = vld [vmem:[%s3925_s18 + $0x398] sm:$0xff]  ;;  %v3571_v28 = vpack.c.bf16 %v2484_v19, %v2483_v0  ;;  %v3619_v0 = vpack.c.bf16 %v2524_v10, %v2523_v8  ;;  %v3589_v19 = vpack.c.bf16 %v2510_v13, %v2509_v11  ;;  %v2579_v58 = vld [vmem:[%s3932_s26 + $0xb00] sm:$0xff]  ;;  %v2549_v8 = vld [vmem:[%s3932_s26 + $0xa10] sm:$0xff] }
  0xc9   : > { %3522 = vmatprep.subr.bf16.mxu0 %v3521_v27  ;;  %v2534_v27 = vld [vmem:[%s3932_s26 + $0x998] sm:$0xff]  ;;  %v3573_v30 = vpack.c.bf16 %v2502_v24, %v2501_v23  ;;  %v2581_v10 = vld [vmem:[%s3932_s26 + $0xb10] sm:$0xff] }
  0xca   : > { %3552 = vmatpush3.bf16.msra.mxu1 %v3551_v26  ;;  %v2533_v26 = vld [vmem:[%s3932_s26 + $0x990] sm:$0xff]  ;;  %v2526_v24 = vld [vmem:[%s3932_s26 + $0x958] sm:$0xff] }
  0xcb   : > { %3554 = vmatprep.subr.bf16.mxu1 %v3553_v31  ;;  %v2485_v31 = vld [vmem:[%s3925_s18 + $0x310] sm:$0xff]  ;;  %v3605_v34 = vpack.c.bf16 %v2534_v27, %v2533_v26  ;;  %v2511_v26 = vld [vmem:[%s3925_s18 + $0x3e0] sm:$0xff]  ;;  %v2512_v27 = vld [vmem:[%s3925_s18 + $0x3e8] sm:$0xff] }
  0xcc   : > { %3524 = vmatpush3.bf16.msra.mxu0 %v3523_v37  ;;  %v2504_v37 = vld [vmem:[%s3925_s18 + $0x3a8] sm:$0xff]  ;;  %v3575_v41 = vpack.c.bf16 %v2486_v32, %v2485_v31  ;;  %v3623_v31 = vpack.c.bf16 %v2526_v24, %v2525_v22  ;;  %v3593_v32 = vpack.c.bf16 %v2512_v27, %v2511_v26  ;;  %v2582_v13 = vld [vmem:[%s3932_s26 + $0xb18] sm:$0xff]  ;;  %v2551_v22 = vld [vmem:[%s3932_s26 + $0xa20] sm:$0xff] }
  0xcd   : > { %3526 = vmatprep.subr.bf16.mxu0 %v3525_v39  ;;  %v2536_v39 = vld [vmem:[%s3932_s26 + $0x9a8] sm:$0xff]  ;;  %v2583_v24 = vld [vmem:[%s3932_s26 + $0xb20] sm:$0xff]  ;;  %v2569_v27 = vld [vmem:[%s3932_s26 + $0xab0] sm:$0xff] }
  0xce   : > { %3556 = vmatpush3.bf16.msra.mxu1 %v3555_v38  ;;  %v2535_v38 = vld [vmem:[%s3932_s26 + $0x9a0] sm:$0xff]  ;;  %v2584_v26 = vld [vmem:[%s3932_s26 + $0xb28] sm:$0xff] }
  0xcf   : > { %3558 = vmatprep.subr.bf16.mxu1 %v3557_v43  ;;  %v3577_v43 = vpack.c.bf16 %v2504_v37, %v2503_v36  ;;  %v3609_v46 = vpack.c.bf16 %v2536_v39, %v2535_v38  ;;  %v2528_v37 = vld [vmem:[%s3932_s26 + $0x968] sm:$0xff]  ;;  %v2513_v38 = vld [vmem:[%s3925_s18 + $0x3f0] sm:$0xff]  ;;  %v2514_v39 = vld [vmem:[%s3925_s18 + $0x3f8] sm:$0xff] }
  0xd0   : > { %3528 = vmatpush3.bf16.msra.mxu0 %v3527_v48  ;;  %v2505_v48 = vld [vmem:[%s3925_s18 + $0x3b0] sm:$0xff]  ;;  %v3627_v44 = vpack.c.bf16 %v2528_v37, %v2527_v35  ;;  %v3597_v45 = vpack.c.bf16 %v2514_v39, %v2513_v38  ;;  %v2571_v37 = vld [vmem:[%s3932_s26 + $0xac0] sm:$0xff]  ;;  %v2604_v39 = vld [vmem:[%s3932_s26 + $0xbc8] sm:$0xff] }
  0xd1   : > { %3530 = vmatprep.subr.bf16.mxu0 %v3529_v50  ;;  %v2537_v50 = vld [vmem:[%s3932_s26 + $0x9b0] sm:$0xff]  ;;  %v2603_v38 = vld [vmem:[%s3932_s26 + $0xbc0] sm:$0xff] }
  0xd2   : > { %3560 = vmatpush3.bf16.msra.mxu1 %v3559_v49  ;;  %v2506_v49 = vld [vmem:[%s3925_s18 + $0x3b8] sm:$0xff]  ;;  %v2585_v35 = vld [vmem:[%s3932_s26 + $0xb30] sm:$0xff] }
  0xd3   : > { %3562 = vmatprep.subr.bf16.mxu1 %v3561_v54  ;;  %v3581_v54 = vpack.c.bf16 %v2506_v49, %v2505_v48  ;;  %v2530_v49 = vld [vmem:[%s3932_s26 + $0x978] sm:$0xff] }
  0xd4   : > { %3532 = vmatpush3.bf16.msra.mxu0 %v3531_v61  ;;  %v2539_v61 = vld [vmem:[%s3932_s26 + $0x9c0] sm:$0xff] }
  0xd5   : > { %3534 = vmatprep.subr.bf16.mxu0 %v3533_v7  ;;  %v3583_v7 = vpack.c.bf16 %v2490_v57, %v2489_v56  ;;  %v3631_v56 = vpack.c.bf16 %v2530_v49, %v2529_v47  ;;  %v2588_v47 = vld [vmem:[%s3932_s26 + $0xb48] sm:$0xff]  ;;  %v2574_v49 = vld [vmem:[%s3932_s26 + $0xad8] sm:$0xff] }
  0xd6   : > { %3564 = vmatpush3.bf16.msra.mxu1 %v3563_v63  ;;  %v2540_v63 = vld [vmem:[%s3932_s26 + $0x9c8] sm:$0xff] }
  0xd7   : > { %3566 = vmatprep.subr.bf16.mxu1 %v3565_v5  ;;  %v2492_v5 = vld [vmem:[%s3925_s18 + $0x348] sm:$0xff]  ;;  %v3617_v9 = vpack.c.bf16 %v2540_v63, %v2539_v61  ;;  %v2565_v61 = vld [vmem:[%s3932_s26 + $0xa90] sm:$0xff]  ;;  %v2566_v63 = vld [vmem:[%s3932_s26 + $0xa98] sm:$0xff] }
  0xd8   : > { %3536 = vmatpush3.bf16.msra.mxu0 %v3535_v14  ;;  %v2541_v14 = vld [vmem:[%s3932_s26 + $0x9d0] sm:$0xff] }
  0xd9   : > { %3570 = vmatprep.subr.bf16.mxu0 %v3569_v18  ;;  %v3587_v18 = vpack.c.bf16 %v2492_v5, %v2491_v4  ;;  %v3637_v5 = vpack.c.bf16 %v2566_v63, %v2565_v61  ;;  %v2607_v61 = vld [vmem:[%s3932_s26 + $0xbe0] sm:$0xff]  ;;  %v2608_v63 = vld [vmem:[%s3932_s26 + $0xbe8] sm:$0xff] }
  0xda   : > { %3568 = vmatpush3.bf16.msra.mxu1 %v3567_v17  ;;  %v2542_v17 = vld [vmem:[%s3932_s26 + $0x9d8] sm:$0xff] }
  0xdb   : > { %3602 = vmatprep.subr.bf16.mxu1 %v3601_v21  ;;  %1489 = vmatmul.mubr.f32.vlgmr.msra.gmra.mrb[10].mxu0 %v4020_v59  ;;  %v2494_v21 = vld [vmem:[%s3925_s18 + $0x358] sm:$0xff]  ;;  %v3621_v23 = vpack.c.bf16 %v2542_v17, %v2541_v14  ;;  %v2567_v14 = vld [vmem:[%s3932_s26 + $0xaa0] sm:$0xff]  ;;  %v2568_v17 = vld [vmem:[%s3932_s26 + $0xaa8] sm:$0xff] }
  0xdc   : > { %3572 = vmatpush3.bf16.msra.mxu0 %v3571_v28  ;;  %1662 = vmatprep.mubr.f32.mxu0 %v4265_v1  ;;  %v3613_v1 = vpack.c.bf16 %v2538_v51, %v2537_v50  ;;  %v2543_v28 = vld [vmem:[%s3932_s26 + $0x9e0] sm:$0xff]  ;;  %v2564_v51 = vld [vmem:[%s3932_s26 + $0xa88] sm:$0xff] }
  0xdd   : > { %1559 = vmatmul.mubr.f32.vlgmr.msra.gmra.mrb[10].mxu1 %v4404_v40  ;;  %3574 = vmatprep.subr.bf16.mxu0 %v3573_v30  ;;  %v3591_v30 = vpack.c.bf16 %v2494_v21, %v2493_v20  ;;  %v2563_v50 = vld [vmem:[%s3932_s26 + $0xa80] sm:$0xff]  ;;  %v3671_v20 = vpack.c.bf16 %v2582_v13, %v2581_v10  ;;  %v3641_v21 = vpack.c.bf16 %v2568_v17, %v2567_v14  ;;  %v2577_v13 = vld [vmem:[%s3932_s26 + $0xaf0] sm:$0xff]  ;;  %v2578_v14 = vld [vmem:[%s3932_s26 + $0xaf8] sm:$0xff] }
  0xde   : > { %3604 = vmatpush3.bf16.msra.mxu1 %v3603_v29  ;;  %1830 = vmatprep.mubr.f32.mxu1 %v3952_v25  ;;  %v2508_v25 = vld [vmem:[%s3925_s18 + $0x3c8] sm:$0xff]  ;;  %v3633_v57 = vpack.c.bf16 %v2564_v51, %v2563_v50  ;;  %v2605_v50 = vld [vmem:[%s3932_s26 + $0xbd0] sm:$0xff]  ;;  %v2606_v51 = vld [vmem:[%s3932_s26 + $0xbd8] sm:$0xff]  ;;  %v3689_v10 = vpack.c.bf16 %v2608_v63, %v2607_v61 }
  0xdf   : > { %3606 = vmatprep.subr.bf16.mxu1 %v3605_v34  ;;  %v3585_v3 = vpack.c.bf16 %v2508_v25, %v2507_v60  ;;  %v2544_v29 = vld [vmem:[%s3932_s26 + $0x9e8] sm:$0xff] }
  0xe0   : > { %3576 = vmatpush3.bf16.msra.mxu0 %v3575_v41  ;;  %v2496_v34 = vld [vmem:[%s3925_s18 + $0x368] sm:$0xff]  ;;  %v3625_v36 = vpack.c.bf16 %v2544_v29, %v2543_v28  ;;  %v2545_v41 = vld [vmem:[%s3932_s26 + $0x9f0] sm:$0xff]  ;;  %v2570_v28 = vld [vmem:[%s3932_s26 + $0xab8] sm:$0xff] }
  0xe1   : > { %3578 = vmatprep.subr.bf16.mxu0 %v3577_v43  ;;  %v3595_v43 = vpack.c.bf16 %v2496_v34, %v2495_v33  ;;  %v2580_v25 = vld [vmem:[%s3932_s26 + $0xb08] sm:$0xff]  ;;  %v2602_v29 = vld [vmem:[%s3932_s26 + $0xbb8] sm:$0xff]  ;;  %v2553_v33 = vld [vmem:[%s3932_s26 + $0xa30] sm:$0xff] }
  0xe2   : > { %3608 = vmatpush3.bf16.msra.mxu1 %v3607_v42  ;;  %v2546_v42 = vld [vmem:[%s3932_s26 + $0x9f8] sm:$0xff]  ;;  %v3667_v4 = vpack.c.bf16 %v2580_v25, %v2579_v58  ;;  %v2576_v25 = vld [vmem:[%s3932_s26 + $0xae8] sm:$0xff] }
  0xe3   : > { %3610 = vmatprep.subr.bf16.mxu1 %v3609_v46  ;;  %v2498_v46 = vld [vmem:[%s3925_s18 + $0x378] sm:$0xff]  ;;  %v3629_v48 = vpack.c.bf16 %v2546_v42, %v2545_v41  ;;  %s4510_s18 = smul.u32 24, %s264_s17 }
  0xe4   : > { %3580 = vmatpush3.bf16.msra.mxu0 %v3579_v52  ;;  %v2595_v52 = vld [vmem:[%s3932_s26 + $0xb80] sm:$0xff]  ;;  %v2554_v34 = vld [vmem:[%s3932_s26 + $0xa38] sm:$0xff] }
  0xe5   : > { %3582 = vmatprep.subr.bf16.mxu0 %v3581_v54  ;;  %v3599_v54 = vpack.c.bf16 %v2498_v46, %v2497_v62  ;;  %v3647_v41 = vpack.c.bf16 %v2554_v34, %v2553_v33  ;;  %v2587_v62 = vld [vmem:[%s3932_s26 + $0xb40] sm:$0xff]  ;;  %v3681_v46 = vpack.c.bf16 %v2604_v39, %v2603_v38  ;;  %v2590_v58 = vld [vmem:[%s3932_s26 + $0xb58] sm:$0xff]  ;;  %s4525_s19 = scalar_lea.vmem [#allocation3], %s4510_s18 }
  0xe6   : > { %3612 = vmatpush3.bf16.msra.mxu1 %v3611_v53  ;;  %v2596_v53 = vld [vmem:[%s3932_s26 + $0xb88] sm:$0xff]  ;;  %s2115_s28 = sshll.u32 %s4525_s19, 4  ;;  %s4552_s28 = int_to_ptr.vmem [resolvable:$true] %s2115_s28 }
  0xe7   : > { %3614 = vmatprep.subr.bf16.mxu1 %v3613_v1  ;;  %v2548_v1 = vld [vmem:[%s3932_s26 + $0xa08] sm:$0xff]  ;;  %v3665_v60 = vpack.c.bf16 %v2596_v53, %v2595_v52  ;;  %v3683_v53 = vpack.c.bf16 %v2588_v47, %v2587_v62  ;;  %s3757_s13 = scalar_lea.vmem %s4552_s28, 384  ;;  %p3764_p0 = scmp.lt.s32.totalorder %s4552_s28, %s3762_s15 }
  0xe8   : > { %3584 = vmatpush3.bf16.msra.mxu0 %v3583_v7  ;;  %v2597_v7 = vld [vmem:[%s3932_s26 + $0xb90] sm:$0xff]  ;;  %p3758_p11 = scmp.ne.s32.totalorder %s4552_s28, %s3757_s13  ;;  %p3765_p1 = scmp.lt.s32.totalorder %s3763_s16, %s3757_s13 }
  0xe9   : > { %3586 = vmatprep.subr.bf16.mxu0 %v3585_v3  ;;  %v3635_v3 = vpack.c.bf16 %v2548_v1, %v2547_v6  ;;  %v2589_v6 = vld [vmem:[%s3932_s26 + $0xb50] sm:$0xff]  ;;  %v3685_v1 = vpack.c.bf16 %v2606_v51, %v2605_v50 }
  0xea   : > { %3616 = vmatpush3.bf16.msra.mxu1 %v3615_v2  ;;  %v2598_v2 = vld [vmem:[%s3932_s26 + $0xb98] sm:$0xff]  ;;  %p3759_p12 = pnand %p3758_p11, %p3900_p5  ;;  %p3766_p2 = por %p3765_p1, %p3764_p0 }
  0xeb   : > { %3618 = vmatprep.subr.bf16.mxu1 %v3617_v9  ;;  %v2550_v9 = vld [vmem:[%s3932_s26 + $0xa18] sm:$0xff]  ;;  %v3669_v11 = vpack.c.bf16 %v2598_v2, %v2597_v7  ;;  %v3687_v2 = vpack.c.bf16 %v2590_v58, %v2589_v6 }
  0xec   : > { %3588 = vmatpush3.bf16.msra.mxu0 %v3587_v18  ;;  %v2599_v18 = vld [vmem:[%s3932_s26 + $0xba0] sm:$0xff]  ;;  %p3760_p13 = pneg %p3759_p12 }
  0xed   : > { %3590 = vmatprep.subr.bf16.mxu0 %v3589_v19  ;;  %v3639_v19 = vpack.c.bf16 %v2550_v9, %v2549_v8  ;;  %v2591_v8 = vld [vmem:[%s3932_s26 + $0xb60] sm:$0xff] }
  0xee   : > { %3620 = vmatpush3.bf16.msra.mxu1 %v3619_v0  ;;  %v2600_v0 = vld [vmem:[%s3932_s26 + $0xba8] sm:$0xff]  ;;  %p3767_p3 = pnand %p3766_p2, %p3760_p13 }
  0xef   : > { %3622 = vmatprep.subr.bf16.mxu1 %v3621_v23  ;;  %v2552_v23 = vld [vmem:[%s3932_s26 + $0xa28] sm:$0xff] }
  0xf0   : > { %3592 = vmatpush3.bf16.msra.mxu0 %v3591_v30  ;;  %v3643_v30 = vpack.c.bf16 %v2552_v23, %v2551_v22 }
  0xf1   : > { %3594 = vmatprep.subr.bf16.mxu0 %v3593_v32  ;;  %v3645_v32 = vpack.c.bf16 %v2570_v28, %v2569_v27  ;;  %v2562_v27 = vld [vmem:[%s3932_s26 + $0xa78] sm:$0xff] }
  0xf2   : > { %3624 = vmatpush3.bf16.msra.mxu1 %v3623_v31  ;;  %v3675_v31 = vpack.c.bf16 %v2584_v26, %v2583_v24  ;;  %v2561_v26 = vld [vmem:[%s3932_s26 + $0xa70] sm:$0xff] }
  0xf3   : > { %3626 = vmatprep.subr.bf16.mxu1 %v3625_v36  ;;  %v2586_v36 = vld [vmem:[%s3932_s26 + $0xb38] sm:$0xff] }
  0xf4   : > { %3596 = vmatpush3.bf16.msra.mxu0 %v3595_v43  ;;  %v3679_v42 = vpack.c.bf16 %v2586_v36, %v2585_v35 }
  0xf5   : > { %3598 = vmatprep.subr.bf16.mxu0 %v3597_v45  ;;  %v2556_v45 = vld [vmem:[%s3932_s26 + $0xa48] sm:$0xff] }
  0xf6   : > { %3628 = vmatpush3.bf16.msra.mxu1 %v3627_v44  ;;  %v2555_v44 = vld [vmem:[%s3932_s26 + $0xa40] sm:$0xff] }
  0xf7   : > { %3630 = vmatprep.subr.bf16.mxu1 %v3629_v48  ;;  %v2573_v48 = vld [vmem:[%s3932_s26 + $0xad0] sm:$0xff]  ;;  %v3651_v52 = vpack.c.bf16 %v2556_v45, %v2555_v44 }
  0xf8   : > { %3600 = vmatpush3.bf16.msra.mxu0 %v3599_v54  ;;  %v3653_v54 = vpack.c.bf16 %v2574_v49, %v2573_v48 }
  0xf9   : > { %3634 = vmatprep.subr.bf16.mxu0 %v3633_v57  ;;  %v2558_v57 = vld [vmem:[%s3932_s26 + $0xa58] sm:$0xff] }
  0xfa   : > { %3632 = vmatpush3.bf16.msra.mxu1 %v3631_v56  ;;  %v2557_v56 = vld [vmem:[%s3932_s26 + $0xa50] sm:$0xff] }
  0xfb   : > { %3666 = vmatprep.subr.bf16.mxu1 %v3665_v60  ;;  %1663 = vmatmul.mubr.f32.vlgmr.msra.gmra.mrb[12].mxu0 %v4328_v55  ;;  %v3673_v55 = vpack.c.bf16 %v2600_v0, %v2599_v18  ;;  %v2575_v60 = vld [vmem:[%s3932_s26 + $0xae0] sm:$0xff]  ;;  %v3655_v7 = vpack.c.bf16 %v2558_v57, %v2557_v56  ;;  %v2609_v0 = vld [vmem:[%s3932_s26 + $0xbf0] sm:$0xff] }
  0xfc   : > { %3636 = vmatpush3.bf16.msra.mxu0 %v3635_v3  ;;  %1900 = vmatprep.mubr.f32.mxu0 %v4042_v12  ;;  %v3657_v3 = vpack.c.bf16 %v2576_v25, %v2575_v60 }
  0xfd   : > { %1831 = vmatmul.mubr.f32.vlgmr.msra.gmra.mrb[12].mxu1 %v3942_v15  ;;  %3638 = vmatprep.subr.bf16.mxu0 %v3637_v5  ;;  %v2601_v15 = vld [vmem:[%s3932_s26 + $0xbb0] sm:$0xff]  ;;  %v2560_v5 = vld [vmem:[%s3932_s26 + $0xa68] sm:$0xff] }
  0xfe   : > { %3668 = vmatpush3.bf16.msra.mxu1 %v3667_v4  ;;  %1970 = vmatprep.mubr.f32.mxu1 %v4049_v16  ;;  %v3677_v12 = vpack.c.bf16 %v2602_v29, %v2601_v15  ;;  %v2572_v16 = vld [vmem:[%s3932_s26 + $0xac8] sm:$0xff]  ;;  %v2559_v4 = vld [vmem:[%s3932_s26 + $0xa60] sm:$0xff]  ;;  %v2593_v15 = vld [vmem:[%s3932_s26 + $0xb70] sm:$0xff] }
  0xff   : > { %3670 = vmatprep.subr.bf16.mxu1 %v3669_v11  ;;  %v3649_v43 = vpack.c.bf16 %v2572_v16, %v2571_v37  ;;  %v2592_v11 = vld [vmem:[%s3932_s26 + $0xb68] sm:$0xff]  ;;  %v3659_v22 = vpack.c.bf16 %v2560_v5, %v2559_v4  ;;  %v2594_v29 = vld [vmem:[%s3932_s26 + $0xb78] sm:$0xff] }
 0x100   : > { %3640 = vmatpush3.bf16.msra.mxu0 %v3639_v19  ;;  %v2610_v19 = vld [vmem:[%s3932_s26 + $0xbf8] sm:$0xff]  ;;  %v3691_v24 = vpack.c.bf16 %v2592_v11, %v2591_v8 }
 0x101   : > { %3642 = vmatprep.subr.bf16.mxu0 %v3641_v21  ;;  %v3693_v28 = vpack.c.bf16 %v2610_v19, %v2609_v0 }
 0x102   : > { %3672 = vmatpush3.bf16.msra.mxu1 %v3671_v20 }
 0x103   : > { %3674 = vmatprep.subr.bf16.mxu1 %v3673_v55  ;;  %v3661_v55 = vpack.c.bf16 %v2578_v14, %v2577_v13 }
 0x104   : > { %3644 = vmatpush3.bf16.msra.mxu0 %v3643_v30  ;;  %v3663_v30 = vpack.c.bf16 %v2562_v27, %v2561_v26 }
 0x105   : > { %3646 = vmatprep.subr.bf16.mxu0 %v3645_v32 }
 0x106   : > { %3676 = vmatpush3.bf16.msra.mxu1 %v3675_v31  ;;  %v3695_v31 = vpack.c.bf16 %v2594_v29, %v2593_v15 }
 0x107   : > { %3678 = vmatprep.subr.bf16.mxu1 %v3677_v12 }
 0x108   : > { %3648 = vmatpush3.bf16.msra.mxu0 %v3647_v41 }
 0x109   : > { %3650 = vmatprep.subr.bf16.mxu0 %v3649_v43 }
 0x10a   : > { %3680 = vmatpush3.bf16.msra.mxu1 %v3679_v42 }
 0x10b   : > { %3682 = vmatprep.subr.bf16.mxu1 %v3681_v46 }
 0x10c   : > { %3652 = vmatpush3.bf16.msra.mxu0 %v3651_v52 }
 0x10d   : > { %3654 = vmatprep.subr.bf16.mxu0 %v3653_v54 }
 0x10e   : > { %3684 = vmatpush3.bf16.msra.mxu1 %v3683_v53  ;;  %v2650_v9 = vpop.f32.mrb[0].mxu0 }
 0x10f   : > { %3686 = vmatprep.subr.bf16.mxu1 %v3685_v1  ;;  %v2651_v17 = vpop.f32.mrb[1].mxu0 }
 0x110   : > { %v2685_v18 = vpop.f32.mrb[0].mxu1  ;;  %v2652_v20 = vadd.f32 %v2651_v17, %v2650_v9  ;;  %3656 = vmatpush3.bf16.msra.mxu0 %v3655_v7 }
 0x111   : > { %v2686_v21 = vpop.f32.mrb[1].mxu1  ;;  %3658 = vmatprep.subr.bf16.mxu0 %v3657_v3 }
 0x112   : > { %v2687_v23 = vadd.f32 %v2686_v21, %v2685_v18  ;;  %3688 = vmatpush3.bf16.msra.mxu1 %v3687_v2  ;;  %399 = vst.msk [vmem:[%s4525_s19] sm:$0x3f] %vm398_vm0, %v2652_v20 }
 0x113   : > { %3690 = vmatprep.subr.bf16.mxu1 %v3689_v10 }
 0x114   : > { %3660 = vmatpush3.bf16.msra.mxu0 %v3659_v22 }
 0x115   : > { %3662 = vmatprep.subr.bf16.mxu0 %v3661_v55 }
 0x116   : > { %3692 = vmatpush3.bf16.msra.mxu1 %v3691_v24 }
 0x117   : > { %3694 = vmatprep.subr.bf16.mxu1 %v3693_v28 }
 0x118   : > { %3664 = vmatpush3.bf16.msra.mxu0 %v3663_v30 }
 0x11a   : > { %3696 = vmatpush3.bf16.msra.mxu1 %v3695_v31 }
 0x11b   : > { %1901 = vmatmul.mubr.f32.vlgmr.msra.gmra.mrb[14].mxu0 %v4020_v59 }
 0x11d   : > { %1971 = vmatmul.mubr.f32.vlgmr.msra.gmra.mrb[14].mxu1 %v4404_v40  ;;  %v1993_v40 = vld [vmem:[%s4611_s4] sm:$0x3] }
 0x11e   : > { %v1994_v44 = vmul.f32 %v1993_v40, %v1993_v40 }
 0x120   : > { %v1995_v47 = vsel %vm739_vm1, %v1994_v44, 0.0 }
 0x121   : > { %1996 = vadd.xlane.f32.xlu0 %v1995_v47 }
 0x12e   : > { %v2720_v32 = vpop.f32.mrb[2].mxu0 }
 0x12f   : > { %v2721_v33 = vpop.f32.mrb[3].mxu0 }
 0x130   : > { %v2755_v34 = vpop.f32.mrb[2].mxu1  ;;  %v2722_v35 = vadd.f32 %v2721_v33, %v2720_v32  ;;  %v3822_v33 = vmov 0.0  }
 0x131   : > { %v2756_v12 = vpop.f32.mrb[3].mxu1  ;;  %3180 = vmatprep.subr.mxu0 %v3822_v33  ;;  %3182 = vmatprep.mubr.msk.f32.mxu0 %vm3823_vm5, %v3822_v33 }
 0x132   : > { %v2757_v36 = vadd.f32 %v2756_v12, %v2755_v34  ;;  %v666_v37 = vadd.f32 %v2722_v35, %v2687_v23 }
 0x134   : > { %v736_v16 = vadd.f32 %v2757_v36, %v666_v37 }
 0x136   : > { %740 = vst.msk [vmem:[#allocation2] sm:$0x3] %vm739_vm1, %v736_v16 }
 0x14e   : > { %v2790_v38 = vpop.f32.mrb[4].mxu0 }
 0x14f   : > { %v2791_v39 = vpop.f32.mrb[5].mxu0 }
 0x150   : > { %v2825_v41 = vpop.f32.mrb[4].mxu1  ;;  %v2792_v42 = vadd.f32 %v2791_v39, %v2790_v38 }
 0x151   : > { %v2826_v43 = vpop.f32.mrb[5].mxu1 }
 0x152   : > { %v2827_v59 = vadd.f32 %v2826_v43, %v2825_v41  ;;  %844 = vst.msk [vmem:[%s4525_s19 + $0x6] sm:$0x3f] %vm398_vm0, %v2792_v42 }
 0x16e   : > { %v2860_v45 = vpop.f32.mrb[6].mxu0 }
 0x16f   : > { %v2861_v62 = vpop.f32.mrb[7].mxu0 }
 0x170   : > { %v2895_v46 = vpop.f32.mrb[6].mxu1  ;;  %v2862_v48 = vadd.f32 %v2861_v62, %v2860_v45 }
 0x171   : > { %v2896_v49 = vpop.f32.mrb[7].mxu1 }
 0x172   : > { %v2897_v50 = vadd.f32 %v2896_v49, %v2895_v46  ;;  %v1079_v51 = vadd.f32 %v2862_v48, %v2827_v59 }
 0x174   : > { %v1149_v52 = vadd.f32 %v2897_v50, %v1079_v51 }
 0x176   : > { %1152 = vst.msk [vmem:[#allocation2 + $0x2] sm:$0x3] %vm739_vm1, %v1149_v52 }
 0x18e   : > { %v2930_v53 = vpop.f32.mrb[8].mxu0 }
 0x18f   : > { %v2931_v54 = vpop.f32.mrb[9].mxu0 }
 0x190   : > { %v2965_v56 = vpop.f32.mrb[8].mxu1  ;;  %v2932_v57 = vadd.f32 %v2931_v54, %v2930_v53 }
 0x191   : > { %v2966_v6 = vpop.f32.mrb[9].mxu1 }
 0x192   : > { %v2967_v1 = vadd.f32 %v2966_v6, %v2965_v56  ;;  %1256 = vst.msk [vmem:[%s4525_s19 + $0xc] sm:$0x3f] %vm398_vm0, %v2932_v57 }
 0x1ae   : > { %v3000_v58 = vpop.f32.mrb[10].mxu0  ;;  %v1997_v23 = vpop.xlane.xlu0 %1996 }
 0x1af   : > { %v3001_v60 = vpop.f32.mrb[11].mxu0  ;;  %3744 = vrsqrt.f32 %v1997_v23  ;;  %vm2000_vm3 = vcmp.eq.f32.partialorder %v1997_v23, inf  ;;  %v2003_v27 = vand.u32 2147483648, %v1997_v23  ;;  %vm2002_vm4 = vcmp.eq.f32.partialorder %v1997_v23, 0.0 }
 0x1b0   : > { %v3035_v25 = vpop.f32.mrb[10].mxu1  ;;  %v3002_v61 = vadd.f32 %v3001_v60, %v3000_v58 }
 0x1b1   : > { %v3036_v63 = vpop.f32.mrb[11].mxu1 }
 0x1b2   : > { %v3037_v7 = vadd.f32 %v3036_v63, %v3035_v25  ;;  %v1491_v2 = vadd.f32 %v3002_v61, %v2967_v1 }
 0x1b4   : > { %v1561_v3 = vadd.f32 %v3037_v7, %v1491_v2 }
 0x1b6   : > { %1564 = vst.msk [vmem:[#allocation2 + $0x4] sm:$0x3] %vm739_vm1, %v1561_v3 }
 0x1b9   : > { %v3745_v26 = vpop.eup %3744 }
 0x1ba   : > { %v1999_v28 = vmul.f32 %v3745_v26, %v1997_v23 }
 0x1bc   : > { %v2001_v15 = vsel %vm2000_vm3, %v1997_v23, %v1999_v28 }
 0x1bd   : > { %v2004_v29 = vsel %vm2002_vm4, %v2003_v27, %v2001_v15 }
 0x1be   : > { %v2005_v30 = vmax.f32 %v2004_v29, 1e-12 }
 0x1c0   : > { %3746 = vrcp.f32 %v2005_v30 }
 0x1ca   : > { %v3747_v31 = vpop.eup %3746 }
 0x1cb   : > { %v2007_v32 = vmul.f32 %v3747_v31, %v1993_v40 }
 0x1cd   : > { %3181 = vmatpush3.xpose.msk.msra.mxu0 %vm1979_vm2, %v2007_v32 }
 0x1ce   : > { %v3070_v4 = vpop.f32.mrb[12].mxu0 }
 0x1cf   : > { %v3071_v5 = vpop.f32.mrb[13].mxu0 }
 0x1d0   : > { %v3105_v8 = vpop.f32.mrb[12].mxu1  ;;  %v3072_v9 = vadd.f32 %v3071_v5, %v3070_v4 }
 0x1d1   : > { %v3106_v10 = vpop.f32.mrb[13].mxu1 }
 0x1d2   : > { %v3107_v11 = vadd.f32 %v3106_v10, %v3105_v8  ;;  %1668 = vst.msk [vmem:[%s4525_s19 + $0x12] sm:$0x3f] %vm398_vm0, %v3072_v9 }
 0x1ee   : > { %v3140_v13 = vpop.f32.mrb[14].mxu0 }
 0x1ef   : > { %v3141_v14 = vpop.f32.mrb[15].mxu0 }
 0x1f0   : > { %v3175_v17 = vpop.f32.mrb[14].mxu1  ;;  %v3142_v18 = vadd.f32 %v3141_v14, %v3140_v13 }
 0x1f1   : > { %v3176_v0 = vpop.f32.mrb[15].mxu1 }
 0x1f2   : > { %v3177_v19 = vadd.f32 %v3176_v0, %v3175_v17  ;;  %v1903_v20 = vadd.f32 %v3142_v18, %v3107_v11 }
 0x1f4   : > { %v1973_v21 = vadd.f32 %v3177_v19, %v1903_v20 }
 0x1f6   : > { %1976 = vst.msk [vmem:[#allocation2 + $0x6] sm:$0x3] %vm739_vm1, %v1973_v21 }
 0x1fd   : > { %v1977_v22 = vld [vmem:[#allocation2] sm:$0xff] }
 0x1fe   : > { %v1978_v24 = vmul.f32 %v1977_v22, %v1977_v22 }
 0x200   : > { %v1980_v55 = vsel %vm1979_vm2, %v1978_v24, 0.0 }
 0x201   : > { %1981 = vadd.xlane.f32.xlu0 %v1980_v55 }
 0x28e   : > { %v1982_v34 = vpop.xlane.xlu0 %1981 }
 0x28f   : > { %3748 = vrsqrt.f32 %v1982_v34  ;;  %vm1985_vm6 = vcmp.eq.f32.partialorder %v1982_v34, inf  ;;  %v1988_v36 = vand.u32 2147483648, %v1982_v34  ;;  %vm1987_vm7 = vcmp.eq.f32.partialorder %v1982_v34, 0.0 }
 0x299   : > { %v3749_v35 = vpop.eup %3748 }
 0x29a   : > { %v1984_v12 = vmul.f32 %v3749_v35, %v1982_v34 }
 0x29c   : > { %v1986_v37 = vsel %vm1985_vm6, %v1982_v34, %v1984_v12 }
 0x29d   : > { %v1989_v16 = vsel %vm1987_vm7, %v1988_v36, %v1986_v37 }
 0x29e   : > { %v1990_v38 = vmax.f32 %v1989_v16, 1e-12 }
 0x2a0   : > { %3750 = vrcp.f32 %v1990_v38 }
 0x2aa   : > { %v3751_v39 = vpop.eup %3750 }
 0x2ab   : > { %v1992_v41 = vmul.f32 %v3751_v39, %v1977_v22 }
 0x2ad   : > { %3183 = vmatmul.mubr.msk.f32.vlgmr.msra.gmra.mrb[16].mxu0 %vm1979_vm2, %v1992_v41 }
 0x2ae   : > { %3770 = shalt.err (!%p3767_p3)
}
 0x2af   : > { %s3771_s17 = scalar_lea.hbm %s4557_s11, 384  ;;  %s3775_s20 = scalar_lea.hbm %s4612_s5, 768 }
 0x2b0   : > { %p3772_p4 = scmp.ne.s32.totalorder %s4557_s11, %s3771_s17  ;;  %p3776_p9 = scmp.lt.u32.totalorder %s4557_s11, %s4612_s5 }
 0x2b1   : > { %p3777_p10 = scmp.lt.u32.totalorder %s3775_s20, %s3771_s17  ;;  %p3779_p12 = scmp.lt.u32.totalorder %s3771_s17, %s4557_s11 }
 0x2b2   : > { %p3773_p7 = pnand %p3772_p4, %p3900_p5 }
 0x2b3   : > { %p3778_p11 = por %p3777_p10, %p3776_p9 }
 0x2b4   : > { %p3774_p8 = pneg %p3773_p7 }
 0x2b5   : > { %p3780_p13 = por %p3779_p12, %p3778_p11 }
 0x2b7   : > { %p3781_p0 = pnand %p3780_p13, %p3774_p8 }
 0x2b9   : > { %3784 = shalt.err (!%p3781_p0)
}
 0x2ba   : > { %s3825_s9 = smov 128   ;;  %s3826_s10 = smov 8   ;;  %vm2095_vm9 = vcmask 15360  }
 0x2bb   : > { %3699 = dma.vmem_to_hbm [thread:$0]  (%p3900_p5), %s4552_s28, 384, %s4557_s11, %s4561_s12, %s3825_s9, %s3825_s9, %s3826_s10  }
 0x2bc   : > { %p288_p1 = scmp.lt.s32.totalorder %s3883_s25, 1 }
 0x2be   : > { %s4623_s25 = smov (!%p288_p1, %s3883_s25), 1 }
 0x2bf   : > { %s2225_s13 = sshll.u32 %s4623_s25, 3 }
 0x2c0   : > { %s291_s16 = scalar_lea.vmem %s4613_s6, %s2225_s13 }
 0x380   : > { %v2080_v42 = vpop.f32.mrb[16].mxu0 }
 0x381   : > { %v2084_v43 = vmul.f32 2.0, %v2080_v42  ;;  %v3184_v59 = vpop.f32.mrb[17].mxu0 }
 0x383   : > { %v2085_v40 = vsub.f32 2.0, %v2084_v43 }
 0x385   : > { %v2086_v44 = vmax.f32 %v2085_v40, 0.0 }
 0x387   : > { %v2087_v45 = vmin.f32 %v2086_v44, 4.0 }
 0x389   : > { %3752 = vrsqrt.f32 %v2087_v45  ;;  %vm2090_vm8 = vcmp.eq.f32.partialorder %v2087_v45, inf  ;;  %v2093_v47 = vand.u32 2147483648, %v2087_v45  ;;  %vm2092_vm10 = vcmp.eq.f32.partialorder %v2087_v45, 0.0 }
 0x393   : > { %v3753_v62 = vpop.eup %3752 }
 0x394   : > { %v2089_v46 = vmul.f32 %v3753_v62, %v2087_v45 }
 0x396   : > { %v2091_v48 = vsel %vm2090_vm8, %v2087_v45, %v2089_v46 }
 0x397   : > { %v2094_v49 = vsel %vm2092_vm10, %v2093_v47, %v2091_v48 }
 0x398   : > { %2096 = vst.msk [vmem:[%s291_s16] sm:$0xff] %vm2095_vm9, %v2094_v49 }
 0x399 PF: > { %p3705_p5 = scmp.ge.s32.totalorder %s3819_s24, 2  ;;  %s2133_s7 = sand.u32 1, %s3807_s21  }
 0x39a   : > { %s2134_s25 = scalar_lea.sflag [#allocation4], %s2133_s7 }
 0x39b   : > { %p3702_p2 = pnand %p3705_p5, %p3904_p6 }
 0x39d   : > { %3802 = dma.done.wait (!%p3702_p2), %s2134_s25, 384  }
 0x39e   : > { %3804 = vsyncadd (!%p3702_p2), %s2134_s25, 4294966912  ;;  %p17_p3 = scmp.ge.s32.totalorder %s3887_s27, 4   ;;  %s4616_s21 = smov %s3811_s22 }
 0x39f   : > { %s4617_s22 = smov %s3815_s23  ;;  %s4618_s23 = smov %s3898_s30 }
 0x3a0   : > { %s4619_s24 = smov %s3887_s27  ;;  %19 = sbr.rel (!%p17_p3) target bundleno = 3 (0x3), region = 96 }
 0x3a7   :  { %2146 = vsyncpa [#allocation4], 1 }
 0x3a8   :  { %2148 = vsyncpa [#allocation4 + $0x1], 1 }

</bundles_post_ra>
